<compile_context>
chip_gen: v5e
topology: v5e:2x2
jax: 0.10.0
libtpu: 0.0.40
codegen_flags: <defaults>
</compile_context>

<pallas_src>
import functools

import jax
import jax.numpy as jnp
from jax.experimental import pallas as pl
from jax.experimental.pallas import tpu as pltpu

NEG_INF = -1.0e9


def _detection_kernel(thres, lam, pair_dt,
                      word_ref, region_ref, amask_ref,
                      w1p_ref, b1p_ref, w2p_ref, b2p_ref,
                      w1n_ref, b1n_ref, w2n_ref, b2n_ref,
                      wfc_ref, bfc_ref,
                      wc1_ref, bc1_ref, wc2_ref, bc2_ref,
                      out_ref):
    f32 = jnp.float32
    word = word_ref[...]          # (Bt, L, E)  compute dtype (bf16 by default)
    region = region_ref[...]      # (Bt, R, E)
    amask = amask_ref[...]        # (Bt, L, 1)  f32

    Bt, L, E = word.shape
    R = region.shape[1]
    HP = w1n_ref.shape[1]
    cdt = word.dtype              # MXU compute dtype (bf16)

    # ---------------- word/region attention (batched, MXU, f32 acc) ---------
    # TODO(synk): attn is computed from bf16-cast inputs; if bit-parity of the
    # (attn > thres) compare vs. an f32 PyTorch reference matters, feed f32.
    attn = jnp.einsum('ble,bre->blr', word, region,
                      preferred_element_type=f32)                      # (Bt,L,R)
    attn_neg = (attn > thres).astype(f32)                              # (Bt,L,R)
    row_neg = jnp.sum(attn_neg, axis=-1, keepdims=True)                # (Bt,L,1) reused

    # attn_pos = softmax(masked_fill(attn, attn<=thres, -1e9) * lambda)
    masked = jnp.where(attn_neg > 0.0, attn, NEG_INF) * lam
    m = jnp.max(masked, axis=-1, keepdims=True)
    e = jnp.exp(masked - m)
    attn_pos = e * pl.reciprocal(jnp.sum(e, axis=-1, keepdims=True),
                                 approx=True)                          # (Bt,L,R)

    pos = jnp.einsum('blr,bre->ble', attn_pos.astype(cdt), region,
                     preferred_element_type=f32) + word.astype(f32)    # (Bt,L,E)

    # words with no region above the threshold (expert_neg_mask)
    no_pos_region = (row_neg == 0.0).astype(f32)                       # (Bt,L,1)

    # ---------------- positive expert ----------------
    hp = jnp.tanh(
        jnp.dot(pos.reshape(Bt * L, E).astype(cdt), w1p_ref[...],
                preferred_element_type=f32).reshape(Bt, L, HP)
        + b1p_ref[...])                                                # (Bt,L,HP)
    # second linear has output width 1 -> VPU dot-product, not an MXU launch
    sp = jax.nn.sigmoid(jnp.sum(hp * w2p_ref[...], axis=-1, keepdims=True)
                        + b2p_ref[...])                                # (Bt,L,1)
    # relu(sigmoid) == sigmoid; boolean-mask gathers -> multiplicative masks
    pos_w = sp * amask * (1.0 - no_pos_region)                         # (Bt,L,1)
    pos_agg = jnp.sum(pos_w * pos, axis=1)                             # (Bt,E)

    # ---------------- negative expert (factored, HP-looped pair scoring) -----
    # Linear(word[l]+region[r]) = word[l]@W1n + region[r]@W1n; fuse both row
    # projections into ONE MXU launch (bigger M, single RHS weight push).
    rows = jnp.concatenate([word.reshape(Bt * L, E),
                            region.reshape(Bt * R, E)], axis=0)        # (Bt*(L+R),E)
    h_all = jnp.dot(rows, w1n_ref[...], preferred_element_type=f32)    # (..,HP)
    hw = h_all[:Bt * L].reshape(Bt, L, HP) + b1n_ref[...]              # (Bt,L,HP) f32
    hr = jnp.swapaxes(h_all[Bt * L:].reshape(Bt, R, HP), 1, 2)         # (Bt,HP,R)

    # Pair scoring WITHOUT a (Bt,L,R,HP) intermediate: loop over HP with a
    # (Bt,L,R) f32 accumulator (R on lanes).  tanh runs in `pair_dt` (bf16 on
    # v6e/v7x; pass f32 on v5e), the accumulation stays f32.
    hw_p = hw.astype(pair_dt)
    hr_p = hr.astype(pair_dt)
    w2n = w2n_ref[...]                                                 # (1,HP) f32
    acc = jnp.zeros((Bt, L, R), f32)
    # TODO(synk): for very large expert_hid switch this static unroll to a
    # lax.fori_loop over HP chunks; for L >> R put L (not R) on the lane axis.
    for h in range(HP):
        t = jnp.tanh(hw_p[:, :, h:h + 1] + hr_p[:, h:h + 1, :])        # (Bt,L,R)
        acc = acc + t.astype(f32) * w2n[:, h:h + 1]
    sn = jax.nn.sigmoid(acc + b2n_ref[...])                            # (Bt,L,R)

    # neg_mask = (1 - attn_neg) * attention_mask
    # TODO(synk): fully-masked L-row blocks could be skipped with pl.when on a
    # per-block mask sum to save EUP work when padding dominates.
    s_w = sn * (1.0 - attn_neg) * amask                                # (Bt,L,R)

    # sum_{l,r} s_w[l,r]*(word[l]+region[r]); reduce over L BEFORE contracting
    # with region (cuts that term's FLOPs by a factor of L).
    sl = jnp.sum(s_w, axis=2, keepdims=True)                           # (Bt,L,1)
    sr = jnp.sum(s_w, axis=1)                                          # (Bt,R)
    neg_agg = (jnp.sum(sl * word.astype(f32), axis=1)
               + jnp.sum(sr[:, :, None] * region.astype(f32), axis=1)) # (Bt,E)

    # ---------------- fc + 2-way softmax (VPU/EUP; no tiny MXU launches) -----
    wfc = wfc_ref[...]                                                 # (1,E)
    c_neg = jnp.sum(neg_agg * wfc, axis=-1, keepdims=True) + bfc_ref[...]
    c_pos = jnp.sum(pos_agg * wfc, axis=-1, keepdims=True) + bfc_ref[...]

    # reference sums attn_neg over ALL (l,r) incl. padded rows -> keep that
    total_neg = jnp.sum(row_neg, axis=1)                               # (Bt,1)
    c_neg = jnp.where(total_neg == 0.0, NEG_INF, c_neg)

    cm = jnp.maximum(c_neg, c_pos)
    e_neg = jnp.exp(c_neg - cm)
    e_pos = jnp.exp(c_pos - cm)
    denom = e_neg + e_pos          # exact divide: only (Bt,1) wide, essentially
    p_neg = e_neg / denom          # free, and guarantees p_neg + p_pos == 1
    p_pos = e_pos / denom

    # bmm(probs, [neg_agg; pos_agg]) as a VPU weighted sum
    final = p_neg * neg_agg + p_pos * pos_agg                          # (Bt,E)

    # ---------------- classifier_corre ----------------
    # TODO(synk): nn.Dropout is stochastic in training; eval-mode identity here.
    hc = jnp.maximum(jnp.dot(final.astype(cdt), wc1_ref[...],
                             preferred_element_type=f32) + bc1_ref[...], 0.0)
    logits = jnp.dot(hc.astype(cdt), wc2_ref[...],
                     preferred_element_type=f32) + bc2_ref[...]        # (Bt,2)

    # single packed output per step: [logits(2) | p_neg | p_pos | pad(4)]
    out_ref[...] = jnp.concatenate(
        [logits, p_neg, p_pos, jnp.zeros((Bt, 4), f32)], axis=1)       # (Bt,8)


def _vmem_bytes_estimate(batch_tile, L, R, E, HP, HD, cbytes, pbytes):
    f = 4
    # double-buffered per-step input/output blocks
    io = 2 * batch_tile * (L * E * cbytes + R * E * cbytes + L * f + 8 * f)
    # weights / biases (small, counted double-buffered)
    pr = 2 * ((2 * E * HP + E * HD + 2 * HD) * cbytes
              + (3 * HP + 2 * E + HD + 8) * f)
    # dominant in-kernel intermediates
    inter = batch_tile * (6 * L * R * f                     # attn/masks/acc/sn/s_w
                          + (L + R) * HP * (f + pbytes)     # hw/hr (+ pair copies)
                          + 3 * L * E * f)                  # pos & aggregation tmps
    return io + pr + inter


def detection_module_forward(word_emb, region_emb, attention_mask, params,
                             thres, lambda_softmax, *, batch_tile=None,
                             compute_dtype=jnp.bfloat16,
                             pair_dtype=jnp.bfloat16):
    """pair_dtype: bf16 for v6e/v7x (bf16 VPU/EUP); pass jnp.float32 on v5e."""
    B, L, E = word_emb.shape
    R = region_emb.shape[1]
    f32 = jnp.float32

    (w1p, b1p, w2p, b2p,
     w1n, b1n, w2n, b2n,
     wfc, bfc, wc1, bc1, wc2, bc2) = params
    HP = w1p.shape[1]
    HD = wc1.shape[1]

    # Host-side layout plumbing: width-1-output weights become f32 row vectors
    # (VPU dot products in-kernel); big weight matrices go to bf16 for the MXU.
    kparams = [
        w1p.astype(compute_dtype), jnp.reshape(b1p, (1, -1)).astype(f32),
        jnp.reshape(w2p, (1, -1)).astype(f32), jnp.reshape(b2p, (1, 1)).astype(f32),
        w1n.astype(compute_dtype), jnp.reshape(b1n, (1, -1)).astype(f32),
        jnp.reshape(w2n, (1, -1)).astype(f32), jnp.reshape(b2n, (1, 1)).astype(f32),
        jnp.reshape(wfc, (1, -1)).astype(f32), jnp.reshape(bfc, (1, 1)).astype(f32),
        wc1.astype(compute_dtype), jnp.reshape(bc1, (1, -1)).astype(f32),
        wc2.astype(compute_dtype), jnp.reshape(bc2, (1, -1)).astype(f32),
    ]

    amask = attention_mask.astype(f32).reshape(B, L, 1)
    data = [word_emb.astype(compute_dtype),
            region_emb.astype(compute_dtype),
            amask]

    # Batch tiling: several samples per step amortize the ~0.35us per-step
    # overhead and give the MXU a usable M dimension, but keep >= 2 grid steps
    # whenever B allows it so both v7x TensorCores get work.
    if batch_tile is None:
        batch_tile = B
        for cand in (8, 4, 2):
            if B % cand == 0 and B // cand >= 2:
                batch_tile = cand
                break
    assert B % batch_tile == 0
    n_tiles = B // batch_tile
    grid = (n_tiles,)

    def batch_spec(shape):
        return pl.BlockSpec((batch_tile,) + tuple(shape[1:]),
                            lambda b, _n=len(shape): (b,) + (0,) * (_n - 1))

    def param_spec(shape):
        return pl.BlockSpec(tuple(shape), lambda b: (0, 0))

    in_specs = ([batch_spec(x.shape) for x in data]
                + [param_spec(p.shape) for p in kparams])

    # Single packed (n_tiles, batch_tile, 8) output: one write-back per step
    # instead of two masked width-2 stores, and the (batch_tile, 8) block
    # always equals the trailing array dims regardless of batch_tile.
    out_shape = jax.ShapeDtypeStruct((n_tiles, batch_tile, 8), f32)
    out_specs = pl.BlockSpec((None, batch_tile, 8), lambda b: (b, 0, 0))

    # Explicit scoped-VMEM sizing, capped at v7x's 64 MiB physical VMEM (the
    # smallest across v5e/v6e/v7x).  Shrink batch_tile if the estimate blows
    # past the cap at large L/R/E.
    est = _vmem_bytes_estimate(batch_tile, L, R, E, HP, HD,
                               jnp.dtype(compute_dtype).itemsize,
                               jnp.dtype(pair_dtype).itemsize)
    vmem_limit = int(min(64 * 1024 * 1024, max(16 * 1024 * 1024, 2 * est)))

    kern = functools.partial(_detection_kernel,
                             float(thres), float(lambda_softmax),
                             jnp.dtype(pair_dtype))

    packed = pl.pallas_call(
        kern,
        grid=grid,
        in_specs=in_specs,
        out_specs=out_specs,
        out_shape=out_shape,
        compiler_params=pltpu.CompilerParams(
            dimension_semantics=("parallel",),
            vmem_limit_bytes=vmem_limit),
    )(*data, *kparams)

    packed = packed.reshape(B, 8)
    return packed[:, 0:2], packed[:, 2:4]


if __name__ == "__main__":
    # ----- small config consistent with the module -----
    B, L, R = 2, 8, 8          # batch, text length, #image regions
    E = 32                     # args.embed_size
    HP = 16                    # args.expert_hid
    HD = 16                    # args.h_dim
    DIMG = 16                  # raw image feature dim
    VOCAB = 50
    THRES = 0.2                # args.thres
    LAMBDA = 4.0               # args.lambda_softmax

    key = jax.random.PRNGKey(0)
    ks = jax.random.split(key, 24)

    # ----- inputs of DetectionModule.forward -----
    input_ids = jax.random.randint(ks[0], (B, L), 0, VOCAB)
    token_type_ids = jnp.zeros((B, L), dtype=jnp.int32)
    lengths = jnp.array([L, L - 2])
    attention_mask = (jnp.arange(L)[None, :] < lengths[:, None]).astype(jnp.float32)
    img_emb = jax.random.normal(ks[1], (B, R, DIMG), jnp.float32) * 0.3

    # The masked-weighted-sum rewrite assumes a prefix (contiguous) mask.
    assert bool(jnp.all(attention_mask[:, 1:] <= attention_mask[:, :-1]))

    # ----- deterministic stand-in encoders (plain-JAX glue) -----
    # TODO(synk): TextEncoder / VisualEncoder are not defined in the reference
    # module; deterministic embedding-lookup / linear stand-ins are used so the
    # Pallas kernel covers the defined hot path (fusion_attention + ExpertNet +
    # fc + classifier_corre).
    word_table = jax.random.normal(ks[2], (VOCAB, E), jnp.float32) * 0.3
    type_table = jax.random.normal(ks[3], (2, E), jnp.float32) * 0.3
    w_vis = jax.random.normal(ks[4], (DIMG, E), jnp.float32) * 0.3
    b_vis = jnp.zeros((E,), jnp.float32)

    word_emb = word_table[input_ids] + type_table[token_type_ids]   # (B, L, E)
    region_emb = img_emb @ w_vis + b_vis                            # (B, R, E)

    # ----- parameters (deterministic init, shapes from __init__) -----
    def lin(k, fin, fout, scale=0.2):
        return jax.random.normal(k, (fin, fout), jnp.float32) * scale

    params = [
        lin(ks[5], E, HP),  jnp.zeros((1, HP), jnp.float32),   # pos_expert.0
        lin(ks[6], HP, 1),  jnp.zeros((1, 1), jnp.float32),    # pos_expert.2
        lin(ks[7], E, HP),  jnp.zeros((1, HP), jnp.float32),   # neg_expert.0
        lin(ks[8], HP, 1),  jnp.zeros((1, 1), jnp.float32),    # neg_expert.2
        lin(ks[9], E, 1),   jnp.zeros((1, 1), jnp.float32),    # fc
        lin(ks[10], E, HD), jnp.zeros((1, HD), jnp.float32),   # classifier_corre.0
        lin(ks[11], HD, 2), jnp.zeros((1, 2), jnp.float32),    # classifier_corre.3
    ]

    logits, path_prob = detection_module_forward(
        word_emb, region_emb, attention_mask, params, THRES, LAMBDA)
    jax.block_until_ready((logits, path_prob))

    assert logits.shape == (B, 2) and path_prob.shape == (B, 2)
    assert bool(jnp.all(jnp.isfinite(logits))) and bool(jnp.all(jnp.isfinite(path_prob)))
    # exact final softmax -> the two path probabilities sum to 1
    assert bool(jnp.all(jnp.abs(jnp.sum(path_prob, axis=1) - 1.0) < 1e-4))
    print("KERNEL_OK")
</pallas_src>

<mosaic_0001>
module attributes {stable_mosaic.version = 11 : i64} {
  func.func @_detection_kernel(%arg0: i32, %arg1: memref<2x8x32xbf16, #tpu.memory_space<vmem>>, %arg2: memref<2x8x32xbf16, #tpu.memory_space<vmem>>, %arg3: memref<2x8x1xf32, #tpu.memory_space<vmem>>, %arg4: memref<32x16xbf16, #tpu.memory_space<vmem>>, %arg5: memref<1x16xf32, #tpu.memory_space<vmem>>, %arg6: memref<1x16xf32, #tpu.memory_space<vmem>>, %arg7: memref<1x1xf32, #tpu.memory_space<vmem>>, %arg8: memref<32x16xbf16, #tpu.memory_space<vmem>>, %arg9: memref<1x16xf32, #tpu.memory_space<vmem>>, %arg10: memref<1x16xf32, #tpu.memory_space<vmem>>, %arg11: memref<1x1xf32, #tpu.memory_space<vmem>>, %arg12: memref<1x32xf32, #tpu.memory_space<vmem>>, %arg13: memref<1x1xf32, #tpu.memory_space<vmem>>, %arg14: memref<32x16xbf16, #tpu.memory_space<vmem>>, %arg15: memref<1x16xf32, #tpu.memory_space<vmem>>, %arg16: memref<16x2xbf16, #tpu.memory_space<vmem>>, %arg17: memref<1x2xf32, #tpu.memory_space<vmem>>, %arg18: memref<1x2x8xf32, #tpu.memory_space<vmem>>) attributes {dimension_semantics = [#tpu.dimension_semantics<parallel>], iteration_bounds = array<i64: 1>, scalar_prefetch = 0 : i64, scratch_operands = 0 : i64, tpu.core_type = #tpu.core_type<tc>, window_params = [{transform_indices = @transform_0, window_bounds = array<i64: 2, 8, 32>}, {transform_indices = @transform_1, window_bounds = array<i64: 2, 8, 32>}, {transform_indices = @transform_2, window_bounds = array<i64: 2, 8, 1>}, {pipeline_mode = #tpu.pipeline_mode<synchronous>, transform_indices = @transform_3, window_bounds = array<i64: 32, 16>}, {pipeline_mode = #tpu.pipeline_mode<synchronous>, transform_indices = @transform_4, window_bounds = array<i64: 1, 16>}, {pipeline_mode = #tpu.pipeline_mode<synchronous>, transform_indices = @transform_5, window_bounds = array<i64: 1, 16>}, {pipeline_mode = #tpu.pipeline_mode<synchronous>, transform_indices = @transform_6, window_bounds = array<i64: 1, 1>}, {pipeline_mode = #tpu.pipeline_mode<synchronous>, transform_indices = @transform_7, window_bounds = array<i64: 32, 16>}, {pipeline_mode = #tpu.pipeline_mode<synchronous>, transform_indices = @transform_8, window_bounds = array<i64: 1, 16>}, {pipeline_mode = #tpu.pipeline_mode<synchronous>, transform_indices = @transform_9, window_bounds = array<i64: 1, 16>}, {pipeline_mode = #tpu.pipeline_mode<synchronous>, transform_indices = @transform_10, window_bounds = array<i64: 1, 1>}, {pipeline_mode = #tpu.pipeline_mode<synchronous>, transform_indices = @transform_11, window_bounds = array<i64: 1, 32>}, {pipeline_mode = #tpu.pipeline_mode<synchronous>, transform_indices = @transform_12, window_bounds = array<i64: 1, 1>}, {pipeline_mode = #tpu.pipeline_mode<synchronous>, transform_indices = @transform_13, window_bounds = array<i64: 32, 16>}, {pipeline_mode = #tpu.pipeline_mode<synchronous>, transform_indices = @transform_14, window_bounds = array<i64: 1, 16>}, {pipeline_mode = #tpu.pipeline_mode<synchronous>, transform_indices = @transform_15, window_bounds = array<i64: 16, 2>}, {pipeline_mode = #tpu.pipeline_mode<synchronous>, transform_indices = @transform_16, window_bounds = array<i64: 1, 2>}, {transform_indices = @transform_17, window_bounds = array<i64: 1, 2, 8>}]} {
    %c0 = arith.constant 0 : index
    %c0_0 = arith.constant 0 : index
    %c0_1 = arith.constant 0 : index
    %0 = vector.load %arg1[%c0, %c0_0, %c0_1] : memref<2x8x32xbf16, #tpu.memory_space<vmem>>, vector<2x8x32xbf16>
    %c0_2 = arith.constant 0 : index
    %c0_3 = arith.constant 0 : index
    %c0_4 = arith.constant 0 : index
    %1 = vector.load %arg2[%c0_2, %c0_3, %c0_4] : memref<2x8x32xbf16, #tpu.memory_space<vmem>>, vector<2x8x32xbf16>
    %c0_5 = arith.constant 0 : index
    %c0_6 = arith.constant 0 : index
    %c0_7 = arith.constant 0 : index
    %2 = vector.load %arg3[%c0_5, %c0_6, %c0_7] : memref<2x8x1xf32, #tpu.memory_space<vmem>>, vector<2x8x1xf32>
    "tpu.trace_start"() <{level = 10 : i32, message = "ble,bre->blr"}> : () -> ()
    %cst = arith.constant dense<0.000000e+00> : vector<2x8x8xf32>
    %3 = tpu.matmul %0, %1, %cst {dimension_numbers = #tpu.dot_dimension_numbers<[2], [2], [1], [1], [0, 0, 0, 1, 1, 1], [0], [0]>} : vector<2x8x32xbf16>, vector<2x8x32xbf16>, vector<2x8x8xf32> -> vector<2x8x8xf32>
    %cst_8 = arith.constant 2.000000e-01 : f32
    "tpu.trace_stop"() : () -> ()
    %4 = vector.broadcast %cst_8 : f32 to vector<2x8x8xf32>
    %5 = arith.cmpf ogt, %3, %4 : vector<2x8x8xf32>
    %6 = arith.extui %5 : vector<2x8x8xi1> to vector<2x8x8xi32>
    %7 = arith.sitofp %6 : vector<2x8x8xi32> to vector<2x8x8xf32>
    %cst_9 = arith.constant dense<0.000000e+00> : vector<2x8xf32>
    %8 = vector.multi_reduction <add>, %7, %cst_9 [2] : vector<2x8x8xf32> to vector<2x8xf32>
    %9 = vector.shape_cast %8 : vector<2x8xf32> to vector<2x8x1xf32>
    %cst_10 = arith.constant 0.000000e+00 : f32
    %10 = vector.broadcast %cst_10 : f32 to vector<2x8x8xf32>
    %11 = arith.cmpf ogt, %7, %10 : vector<2x8x8xf32>
    %cst_11 = arith.constant -1.000000e+09 : f32
    %12 = vector.broadcast %cst_11 : f32 to vector<2x8x8xf32>
    %13 = arith.select %11, %3, %12 : vector<2x8x8xi1>, vector<2x8x8xf32>
    %cst_12 = arith.constant 4.000000e+00 : f32
    %14 = vector.broadcast %cst_12 : f32 to vector<2x8x8xf32>
    %15 = arith.mulf %13, %14 : vector<2x8x8xf32>
    %cst_13 = arith.constant dense<0xFF800000> : vector<2x8xf32>
    %16 = vector.multi_reduction <maximumf>, %15, %cst_13 [2] : vector<2x8x8xf32> to vector<2x8xf32>
    %17 = vector.shape_cast %16 : vector<2x8xf32> to vector<2x8x1xf32>
    %18 = vector.broadcast %17 : vector<2x8x1xf32> to vector<2x8x8xf32>
    %19 = arith.subf %15, %18 : vector<2x8x8xf32>
    %20 = math.exp %19 : vector<2x8x8xf32>
    %cst_14 = arith.constant dense<0.000000e+00> : vector<2x8xf32>
    %21 = vector.multi_reduction <add>, %20, %cst_14 [2] : vector<2x8x8xf32> to vector<2x8xf32>
    %22 = vector.shape_cast %21 : vector<2x8xf32> to vector<2x8x1xf32>
    %23 = tpu.reciprocal %22 {approx = true} : vector<2x8x1xf32> -> vector<2x8x1xf32>
    %24 = vector.broadcast %23 : vector<2x8x1xf32> to vector<2x8x8xf32>
    %25 = arith.mulf %20, %24 : vector<2x8x8xf32>
    %26 = arith.truncf %25 : vector<2x8x8xf32> to vector<2x8x8xbf16>
    "tpu.trace_start"() <{level = 10 : i32, message = "blr,bre->ble"}> : () -> ()
    %cst_15 = arith.constant dense<0.000000e+00> : vector<2x8x32xf32>
    %27 = tpu.matmul %26, %1, %cst_15 {dimension_numbers = #tpu.dot_dimension_numbers<[2], [1], [1], [2], [0, 0, 0, 1, 1, 2], [0], [0]>} : vector<2x8x8xbf16>, vector<2x8x32xbf16>, vector<2x8x32xf32> -> vector<2x8x32xf32>
    "tpu.trace_stop"() : () -> ()
    %28 = arith.extf %0 : vector<2x8x32xbf16> to vector<2x8x32xf32>
    %29 = arith.addf %27, %28 : vector<2x8x32xf32>
    %cst_16 = arith.constant 0.000000e+00 : f32
    %30 = vector.broadcast %cst_16 : f32 to vector<2x8x1xf32>
    %31 = arith.cmpf oeq, %9, %30 : vector<2x8x1xf32>
    %32 = arith.extui %31 : vector<2x8x1xi1> to vector<2x8x1xi32>
    %33 = arith.sitofp %32 : vector<2x8x1xi32> to vector<2x8x1xf32>
    %34 = vector.shape_cast %29 : vector<2x8x32xf32> to vector<16x32xf32>
    %35 = arith.truncf %34 : vector<16x32xf32> to vector<16x32xbf16>
    %c0_17 = arith.constant 0 : index
    %c0_18 = arith.constant 0 : index
    %36 = vector.load %arg4[%c0_17, %c0_18] : memref<32x16xbf16, #tpu.memory_space<vmem>>, vector<32x16xbf16>
    %cst_19 = arith.constant dense<0.000000e+00> : vector<16x16xf32>
    %37 = tpu.matmul %35, %36, %cst_19 {dimension_numbers = #tpu.dot_dimension_numbers<[1], [0], [0], [1], [0, 0, 1, 1], [], []>} : vector<16x32xbf16>, vector<32x16xbf16>, vector<16x16xf32> -> vector<16x16xf32>
    %38 = vector.shape_cast %37 : vector<16x16xf32> to vector<2x8x16xf32>
    %c0_20 = arith.constant 0 : index
    %c0_21 = arith.constant 0 : index
    %39 = vector.load %arg5[%c0_20, %c0_21] : memref<1x16xf32, #tpu.memory_space<vmem>>, vector<1x16xf32>
    %40 = vector.shape_cast %39 : vector<1x16xf32> to vector<1x1x16xf32>
    %41 = vector.broadcast %40 : vector<1x1x16xf32> to vector<2x8x16xf32>
    %42 = arith.addf %38, %41 : vector<2x8x16xf32>
    %43 = math.tanh %42 : vector<2x8x16xf32>
    %c0_22 = arith.constant 0 : index
    %c0_23 = arith.constant 0 : index
    %44 = vector.load %arg6[%c0_22, %c0_23] : memref<1x16xf32, #tpu.memory_space<vmem>>, vector<1x16xf32>
    %45 = vector.shape_cast %44 : vector<1x16xf32> to vector<1x1x16xf32>
    %46 = vector.broadcast %45 : vector<1x1x16xf32> to vector<2x8x16xf32>
    %47 = arith.mulf %43, %46 : vector<2x8x16xf32>
    %cst_24 = arith.constant dense<0.000000e+00> : vector<2x8xf32>
    %48 = vector.multi_reduction <add>, %47, %cst_24 [2] : vector<2x8x16xf32> to vector<2x8xf32>
    %49 = vector.shape_cast %48 : vector<2x8xf32> to vector<2x8x1xf32>
    %c0_25 = arith.constant 0 : index
    %c0_26 = arith.constant 0 : index
    %50 = vector.load %arg7[%c0_25, %c0_26] : memref<1x1xf32, #tpu.memory_space<vmem>>, vector<1x1xf32>
    %51 = vector.shape_cast %50 : vector<1x1xf32> to vector<1x1x1xf32>
    %52 = vector.broadcast %51 : vector<1x1x1xf32> to vector<2x8x1xf32>
    %53 = arith.addf %49, %52 : vector<2x8x1xf32>
    %54 = arith.negf %53 : vector<2x8x1xf32>
    %55 = math.exp %54 : vector<2x8x1xf32>
    %cst_27 = arith.constant 1.000000e+00 : f32
    %56 = vector.broadcast %cst_27 : f32 to vector<2x8x1xf32>
    %57 = arith.addf %56, %55 : vector<2x8x1xf32>
    %58 = arith.divf %56, %57 : vector<2x8x1xf32>
    %59 = arith.mulf %58, %2 : vector<2x8x1xf32>
    %cst_28 = arith.constant 1.000000e+00 : f32
    %60 = vector.broadcast %cst_28 : f32 to vector<2x8x1xf32>
    %61 = arith.subf %60, %33 : vector<2x8x1xf32>
    %62 = arith.mulf %59, %61 : vector<2x8x1xf32>
    %63 = vector.broadcast %62 : vector<2x8x1xf32> to vector<2x8x32xf32>
    %64 = arith.mulf %63, %29 : vector<2x8x32xf32>
    %cst_29 = arith.constant dense<0.000000e+00> : vector<2x32xf32>
    %65 = vector.multi_reduction <add>, %64, %cst_29 [1] : vector<2x8x32xf32> to vector<2x32xf32>
    %66 = vector.shape_cast %0 : vector<2x8x32xbf16> to vector<16x32xbf16>
    %67 = vector.shape_cast %1 : vector<2x8x32xbf16> to vector<16x32xbf16>
    %68 = tpu.concatenate %66, %67 in 0 : vector<16x32xbf16>, vector<16x32xbf16> -> vector<32x32xbf16>
    %c0_30 = arith.constant 0 : index
    %c0_31 = arith.constant 0 : index
    %69 = vector.load %arg8[%c0_30, %c0_31] : memref<32x16xbf16, #tpu.memory_space<vmem>>, vector<32x16xbf16>
    %cst_32 = arith.constant dense<0.000000e+00> : vector<32x16xf32>
    %70 = tpu.matmul %68, %69, %cst_32 {dimension_numbers = #tpu.dot_dimension_numbers<[1], [0], [0], [1], [0, 0, 1, 1], [], []>} : vector<32x32xbf16>, vector<32x16xbf16>, vector<32x16xf32> -> vector<32x16xf32>
    %71 = vector.extract_strided_slice %70 {offsets = [0, 0], sizes = [16, 16], strides = [1, 1]} : vector<32x16xf32> to vector<16x16xf32>
    %72 = vector.shape_cast %71 : vector<16x16xf32> to vector<2x8x16xf32>
    %c0_33 = arith.constant 0 : index
    %c0_34 = arith.constant 0 : index
    %73 = vector.load %arg9[%c0_33, %c0_34] : memref<1x16xf32, #tpu.memory_space<vmem>>, vector<1x16xf32>
    %74 = vector.shape_cast %73 : vector<1x16xf32> to vector<1x1x16xf32>
    %75 = vector.broadcast %74 : vector<1x1x16xf32> to vector<2x8x16xf32>
    %76 = arith.addf %72, %75 : vector<2x8x16xf32>
    %77 = vector.extract_strided_slice %70 {offsets = [16, 0], sizes = [16, 16], strides = [1, 1]} : vector<32x16xf32> to vector<16x16xf32>
    %78 = vector.shape_cast %77 : vector<16x16xf32> to vector<2x8x16xf32>
    %79 = tpu.transpose %78, [0, 2, 1] : vector<2x8x16xf32> -> vector<2x16x8xf32>
    %80 = arith.truncf %76 : vector<2x8x16xf32> to vector<2x8x16xbf16>
    %81 = arith.truncf %79 : vector<2x16x8xf32> to vector<2x16x8xbf16>
    %c0_35 = arith.constant 0 : index
    %c0_36 = arith.constant 0 : index
    %82 = vector.load %arg10[%c0_35, %c0_36] : memref<1x16xf32, #tpu.memory_space<vmem>>, vector<1x16xf32>
    %cst_37 = arith.constant 0.000000e+00 : f32
    %83 = vector.broadcast %cst_37 : f32 to vector<2x8x8xf32>
    %84 = vector.extract_strided_slice %80 {offsets = [0, 0, 0], sizes = [2, 8, 1], strides = [1, 1, 1]} : vector<2x8x16xbf16> to vector<2x8x1xbf16>
    %85 = vector.extract_strided_slice %81 {offsets = [0, 0, 0], sizes = [2, 1, 8], strides = [1, 1, 1]} : vector<2x16x8xbf16> to vector<2x1x8xbf16>
    %86 = vector.broadcast %84 : vector<2x8x1xbf16> to vector<2x8x8xbf16>
    %87 = vector.broadcast %85 : vector<2x1x8xbf16> to vector<2x8x8xbf16>
    %88 = arith.addf %86, %87 : vector<2x8x8xbf16>
    %89 = math.tanh %88 : vector<2x8x8xbf16>
    %90 = arith.extf %89 : vector<2x8x8xbf16> to vector<2x8x8xf32>
    %91 = vector.extract_strided_slice %82 {offsets = [0, 0], sizes = [1, 1], strides = [1, 1]} : vector<1x16xf32> to vector<1x1xf32>
    %92 = vector.shape_cast %91 : vector<1x1xf32> to vector<1x1x1xf32>
    %93 = vector.broadcast %92 : vector<1x1x1xf32> to vector<2x8x8xf32>
    %94 = arith.mulf %90, %93 : vector<2x8x8xf32>
    %95 = arith.addf %83, %94 : vector<2x8x8xf32>
    %96 = vector.extract_strided_slice %80 {offsets = [0, 0, 1], sizes = [2, 8, 1], strides = [1, 1, 1]} : vector<2x8x16xbf16> to vector<2x8x1xbf16>
    %97 = vector.extract_strided_slice %81 {offsets = [0, 1, 0], sizes = [2, 1, 8], strides = [1, 1, 1]} : vector<2x16x8xbf16> to vector<2x1x8xbf16>
    %98 = vector.broadcast %96 : vector<2x8x1xbf16> to vector<2x8x8xbf16>
    %99 = vector.broadcast %97 : vector<2x1x8xbf16> to vector<2x8x8xbf16>
    %100 = arith.addf %98, %99 : vector<2x8x8xbf16>
    %101 = math.tanh %100 : vector<2x8x8xbf16>
    %102 = arith.extf %101 : vector<2x8x8xbf16> to vector<2x8x8xf32>
    %103 = vector.extract_strided_slice %82 {offsets = [0, 1], sizes = [1, 1], strides = [1, 1]} : vector<1x16xf32> to vector<1x1xf32>
    %104 = vector.shape_cast %103 : vector<1x1xf32> to vector<1x1x1xf32>
    %105 = vector.broadcast %104 : vector<1x1x1xf32> to vector<2x8x8xf32>
    %106 = arith.mulf %102, %105 : vector<2x8x8xf32>
    %107 = arith.addf %95, %106 : vector<2x8x8xf32>
    %108 = vector.extract_strided_slice %80 {offsets = [0, 0, 2], sizes = [2, 8, 1], strides = [1, 1, 1]} : vector<2x8x16xbf16> to vector<2x8x1xbf16>
    %109 = vector.extract_strided_slice %81 {offsets = [0, 2, 0], sizes = [2, 1, 8], strides = [1, 1, 1]} : vector<2x16x8xbf16> to vector<2x1x8xbf16>
    %110 = vector.broadcast %108 : vector<2x8x1xbf16> to vector<2x8x8xbf16>
    %111 = vector.broadcast %109 : vector<2x1x8xbf16> to vector<2x8x8xbf16>
    %112 = arith.addf %110, %111 : vector<2x8x8xbf16>
    %113 = math.tanh %112 : vector<2x8x8xbf16>
    %114 = arith.extf %113 : vector<2x8x8xbf16> to vector<2x8x8xf32>
    %115 = vector.extract_strided_slice %82 {offsets = [0, 2], sizes = [1, 1], strides = [1, 1]} : vector<1x16xf32> to vector<1x1xf32>
    %116 = vector.shape_cast %115 : vector<1x1xf32> to vector<1x1x1xf32>
    %117 = vector.broadcast %116 : vector<1x1x1xf32> to vector<2x8x8xf32>
    %118 = arith.mulf %114, %117 : vector<2x8x8xf32>
    %119 = arith.addf %107, %118 : vector<2x8x8xf32>
    %120 = vector.extract_strided_slice %80 {offsets = [0, 0, 3], sizes = [2, 8, 1], strides = [1, 1, 1]} : vector<2x8x16xbf16> to vector<2x8x1xbf16>
    %121 = vector.extract_strided_slice %81 {offsets = [0, 3, 0], sizes = [2, 1, 8], strides = [1, 1, 1]} : vector<2x16x8xbf16> to vector<2x1x8xbf16>
    %122 = vector.broadcast %120 : vector<2x8x1xbf16> to vector<2x8x8xbf16>
    %123 = vector.broadcast %121 : vector<2x1x8xbf16> to vector<2x8x8xbf16>
    %124 = arith.addf %122, %123 : vector<2x8x8xbf16>
    %125 = math.tanh %124 : vector<2x8x8xbf16>
    %126 = arith.extf %125 : vector<2x8x8xbf16> to vector<2x8x8xf32>
    %127 = vector.extract_strided_slice %82 {offsets = [0, 3], sizes = [1, 1], strides = [1, 1]} : vector<1x16xf32> to vector<1x1xf32>
    %128 = vector.shape_cast %127 : vector<1x1xf32> to vector<1x1x1xf32>
    %129 = vector.broadcast %128 : vector<1x1x1xf32> to vector<2x8x8xf32>
    %130 = arith.mulf %126, %129 : vector<2x8x8xf32>
    %131 = arith.addf %119, %130 : vector<2x8x8xf32>
    %132 = vector.extract_strided_slice %80 {offsets = [0, 0, 4], sizes = [2, 8, 1], strides = [1, 1, 1]} : vector<2x8x16xbf16> to vector<2x8x1xbf16>
    %133 = vector.extract_strided_slice %81 {offsets = [0, 4, 0], sizes = [2, 1, 8], strides = [1, 1, 1]} : vector<2x16x8xbf16> to vector<2x1x8xbf16>
    %134 = vector.broadcast %132 : vector<2x8x1xbf16> to vector<2x8x8xbf16>
    %135 = vector.broadcast %133 : vector<2x1x8xbf16> to vector<2x8x8xbf16>
    %136 = arith.addf %134, %135 : vector<2x8x8xbf16>
    %137 = math.tanh %136 : vector<2x8x8xbf16>
    %138 = arith.extf %137 : vector<2x8x8xbf16> to vector<2x8x8xf32>
    %139 = vector.extract_strided_slice %82 {offsets = [0, 4], sizes = [1, 1], strides = [1, 1]} : vector<1x16xf32> to vector<1x1xf32>
    %140 = vector.shape_cast %139 : vector<1x1xf32> to vector<1x1x1xf32>
    %141 = vector.broadcast %140 : vector<1x1x1xf32> to vector<2x8x8xf32>
    %142 = arith.mulf %138, %141 : vector<2x8x8xf32>
    %143 = arith.addf %131, %142 : vector<2x8x8xf32>
    %144 = vector.extract_strided_slice %80 {offsets = [0, 0, 5], sizes = [2, 8, 1], strides = [1, 1, 1]} : vector<2x8x16xbf16> to vector<2x8x1xbf16>
    %145 = vector.extract_strided_slice %81 {offsets = [0, 5, 0], sizes = [2, 1, 8], strides = [1, 1, 1]} : vector<2x16x8xbf16> to vector<2x1x8xbf16>
    %146 = vector.broadcast %144 : vector<2x8x1xbf16> to vector<2x8x8xbf16>
    %147 = vector.broadcast %145 : vector<2x1x8xbf16> to vector<2x8x8xbf16>
    %148 = arith.addf %146, %147 : vector<2x8x8xbf16>
    %149 = math.tanh %148 : vector<2x8x8xbf16>
    %150 = arith.extf %149 : vector<2x8x8xbf16> to vector<2x8x8xf32>
    %151 = vector.extract_strided_slice %82 {offsets = [0, 5], sizes = [1, 1], strides = [1, 1]} : vector<1x16xf32> to vector<1x1xf32>
    %152 = vector.shape_cast %151 : vector<1x1xf32> to vector<1x1x1xf32>
    %153 = vector.broadcast %152 : vector<1x1x1xf32> to vector<2x8x8xf32>
    %154 = arith.mulf %150, %153 : vector<2x8x8xf32>
    %155 = arith.addf %143, %154 : vector<2x8x8xf32>
    %156 = vector.extract_strided_slice %80 {offsets = [0, 0, 6], sizes = [2, 8, 1], strides = [1, 1, 1]} : vector<2x8x16xbf16> to vector<2x8x1xbf16>
    %157 = vector.extract_strided_slice %81 {offsets = [0, 6, 0], sizes = [2, 1, 8], strides = [1, 1, 1]} : vector<2x16x8xbf16> to vector<2x1x8xbf16>
    %158 = vector.broadcast %156 : vector<2x8x1xbf16> to vector<2x8x8xbf16>
    %159 = vector.broadcast %157 : vector<2x1x8xbf16> to vector<2x8x8xbf16>
    %160 = arith.addf %158, %159 : vector<2x8x8xbf16>
    %161 = math.tanh %160 : vector<2x8x8xbf16>
    %162 = arith.extf %161 : vector<2x8x8xbf16> to vector<2x8x8xf32>
    %163 = vector.extract_strided_slice %82 {offsets = [0, 6], sizes = [1, 1], strides = [1, 1]} : vector<1x16xf32> to vector<1x1xf32>
    %164 = vector.shape_cast %163 : vector<1x1xf32> to vector<1x1x1xf32>
    %165 = vector.broadcast %164 : vector<1x1x1xf32> to vector<2x8x8xf32>
    %166 = arith.mulf %162, %165 : vector<2x8x8xf32>
    %167 = arith.addf %155, %166 : vector<2x8x8xf32>
    %168 = vector.extract_strided_slice %80 {offsets = [0, 0, 7], sizes = [2, 8, 1], strides = [1, 1, 1]} : vector<2x8x16xbf16> to vector<2x8x1xbf16>
    %169 = vector.extract_strided_slice %81 {offsets = [0, 7, 0], sizes = [2, 1, 8], strides = [1, 1, 1]} : vector<2x16x8xbf16> to vector<2x1x8xbf16>
    %170 = vector.broadcast %168 : vector<2x8x1xbf16> to vector<2x8x8xbf16>
    %171 = vector.broadcast %169 : vector<2x1x8xbf16> to vector<2x8x8xbf16>
    %172 = arith.addf %170, %171 : vector<2x8x8xbf16>
    %173 = math.tanh %172 : vector<2x8x8xbf16>
    %174 = arith.extf %173 : vector<2x8x8xbf16> to vector<2x8x8xf32>
    %175 = vector.extract_strided_slice %82 {offsets = [0, 7], sizes = [1, 1], strides = [1, 1]} : vector<1x16xf32> to vector<1x1xf32>
    %176 = vector.shape_cast %175 : vector<1x1xf32> to vector<1x1x1xf32>
    %177 = vector.broadcast %176 : vector<1x1x1xf32> to vector<2x8x8xf32>
    %178 = arith.mulf %174, %177 : vector<2x8x8xf32>
    %179 = arith.addf %167, %178 : vector<2x8x8xf32>
    %180 = vector.extract_strided_slice %80 {offsets = [0, 0, 8], sizes = [2, 8, 1], strides = [1, 1, 1]} : vector<2x8x16xbf16> to vector<2x8x1xbf16>
    %181 = vector.extract_strided_slice %81 {offsets = [0, 8, 0], sizes = [2, 1, 8], strides = [1, 1, 1]} : vector<2x16x8xbf16> to vector<2x1x8xbf16>
    %182 = vector.broadcast %180 : vector<2x8x1xbf16> to vector<2x8x8xbf16>
    %183 = vector.broadcast %181 : vector<2x1x8xbf16> to vector<2x8x8xbf16>
    %184 = arith.addf %182, %183 : vector<2x8x8xbf16>
    %185 = math.tanh %184 : vector<2x8x8xbf16>
    %186 = arith.extf %185 : vector<2x8x8xbf16> to vector<2x8x8xf32>
    %187 = vector.extract_strided_slice %82 {offsets = [0, 8], sizes = [1, 1], strides = [1, 1]} : vector<1x16xf32> to vector<1x1xf32>
    %188 = vector.shape_cast %187 : vector<1x1xf32> to vector<1x1x1xf32>
    %189 = vector.broadcast %188 : vector<1x1x1xf32> to vector<2x8x8xf32>
    %190 = arith.mulf %186, %189 : vector<2x8x8xf32>
    %191 = arith.addf %179, %190 : vector<2x8x8xf32>
    %192 = vector.extract_strided_slice %80 {offsets = [0, 0, 9], sizes = [2, 8, 1], strides = [1, 1, 1]} : vector<2x8x16xbf16> to vector<2x8x1xbf16>
    %193 = vector.extract_strided_slice %81 {offsets = [0, 9, 0], sizes = [2, 1, 8], strides = [1, 1, 1]} : vector<2x16x8xbf16> to vector<2x1x8xbf16>
    %194 = vector.broadcast %192 : vector<2x8x1xbf16> to vector<2x8x8xbf16>
    %195 = vector.broadcast %193 : vector<2x1x8xbf16> to vector<2x8x8xbf16>
    %196 = arith.addf %194, %195 : vector<2x8x8xbf16>
    %197 = math.tanh %196 : vector<2x8x8xbf16>
    %198 = arith.extf %197 : vector<2x8x8xbf16> to vector<2x8x8xf32>
    %199 = vector.extract_strided_slice %82 {offsets = [0, 9], sizes = [1, 1], strides = [1, 1]} : vector<1x16xf32> to vector<1x1xf32>
    %200 = vector.shape_cast %199 : vector<1x1xf32> to vector<1x1x1xf32>
    %201 = vector.broadcast %200 : vector<1x1x1xf32> to vector<2x8x8xf32>
    %202 = arith.mulf %198, %201 : vector<2x8x8xf32>
    %203 = arith.addf %191, %202 : vector<2x8x8xf32>
    %204 = vector.extract_strided_slice %80 {offsets = [0, 0, 10], sizes = [2, 8, 1], strides = [1, 1, 1]} : vector<2x8x16xbf16> to vector<2x8x1xbf16>
    %205 = vector.extract_strided_slice %81 {offsets = [0, 10, 0], sizes = [2, 1, 8], strides = [1, 1, 1]} : vector<2x16x8xbf16> to vector<2x1x8xbf16>
    %206 = vector.broadcast %204 : vector<2x8x1xbf16> to vector<2x8x8xbf16>
    %207 = vector.broadcast %205 : vector<2x1x8xbf16> to vector<2x8x8xbf16>
    %208 = arith.addf %206, %207 : vector<2x8x8xbf16>
    %209 = math.tanh %208 : vector<2x8x8xbf16>
    %210 = arith.extf %209 : vector<2x8x8xbf16> to vector<2x8x8xf32>
    %211 = vector.extract_strided_slice %82 {offsets = [0, 10], sizes = [1, 1], strides = [1, 1]} : vector<1x16xf32> to vector<1x1xf32>
    %212 = vector.shape_cast %211 : vector<1x1xf32> to vector<1x1x1xf32>
    %213 = vector.broadcast %212 : vector<1x1x1xf32> to vector<2x8x8xf32>
    %214 = arith.mulf %210, %213 : vector<2x8x8xf32>
    %215 = arith.addf %203, %214 : vector<2x8x8xf32>
    %216 = vector.extract_strided_slice %80 {offsets = [0, 0, 11], sizes = [2, 8, 1], strides = [1, 1, 1]} : vector<2x8x16xbf16> to vector<2x8x1xbf16>
    %217 = vector.extract_strided_slice %81 {offsets = [0, 11, 0], sizes = [2, 1, 8], strides = [1, 1, 1]} : vector<2x16x8xbf16> to vector<2x1x8xbf16>
    %218 = vector.broadcast %216 : vector<2x8x1xbf16> to vector<2x8x8xbf16>
    %219 = vector.broadcast %217 : vector<2x1x8xbf16> to vector<2x8x8xbf16>
    %220 = arith.addf %218, %219 : vector<2x8x8xbf16>
    %221 = math.tanh %220 : vector<2x8x8xbf16>
    %222 = arith.extf %221 : vector<2x8x8xbf16> to vector<2x8x8xf32>
    %223 = vector.extract_strided_slice %82 {offsets = [0, 11], sizes = [1, 1], strides = [1, 1]} : vector<1x16xf32> to vector<1x1xf32>
    %224 = vector.shape_cast %223 : vector<1x1xf32> to vector<1x1x1xf32>
    %225 = vector.broadcast %224 : vector<1x1x1xf32> to vector<2x8x8xf32>
    %226 = arith.mulf %222, %225 : vector<2x8x8xf32>
    %227 = arith.addf %215, %226 : vector<2x8x8xf32>
    %228 = vector.extract_strided_slice %80 {offsets = [0, 0, 12], sizes = [2, 8, 1], strides = [1, 1, 1]} : vector<2x8x16xbf16> to vector<2x8x1xbf16>
    %229 = vector.extract_strided_slice %81 {offsets = [0, 12, 0], sizes = [2, 1, 8], strides = [1, 1, 1]} : vector<2x16x8xbf16> to vector<2x1x8xbf16>
    %230 = vector.broadcast %228 : vector<2x8x1xbf16> to vector<2x8x8xbf16>
    %231 = vector.broadcast %229 : vector<2x1x8xbf16> to vector<2x8x8xbf16>
    %232 = arith.addf %230, %231 : vector<2x8x8xbf16>
    %233 = math.tanh %232 : vector<2x8x8xbf16>
    %234 = arith.extf %233 : vector<2x8x8xbf16> to vector<2x8x8xf32>
    %235 = vector.extract_strided_slice %82 {offsets = [0, 12], sizes = [1, 1], strides = [1, 1]} : vector<1x16xf32> to vector<1x1xf32>
    %236 = vector.shape_cast %235 : vector<1x1xf32> to vector<1x1x1xf32>
    %237 = vector.broadcast %236 : vector<1x1x1xf32> to vector<2x8x8xf32>
    %238 = arith.mulf %234, %237 : vector<2x8x8xf32>
    %239 = arith.addf %227, %238 : vector<2x8x8xf32>
    %240 = vector.extract_strided_slice %80 {offsets = [0, 0, 13], sizes = [2, 8, 1], strides = [1, 1, 1]} : vector<2x8x16xbf16> to vector<2x8x1xbf16>
    %241 = vector.extract_strided_slice %81 {offsets = [0, 13, 0], sizes = [2, 1, 8], strides = [1, 1, 1]} : vector<2x16x8xbf16> to vector<2x1x8xbf16>
    %242 = vector.broadcast %240 : vector<2x8x1xbf16> to vector<2x8x8xbf16>
    %243 = vector.broadcast %241 : vector<2x1x8xbf16> to vector<2x8x8xbf16>
    %244 = arith.addf %242, %243 : vector<2x8x8xbf16>
    %245 = math.tanh %244 : vector<2x8x8xbf16>
    %246 = arith.extf %245 : vector<2x8x8xbf16> to vector<2x8x8xf32>
    %247 = vector.extract_strided_slice %82 {offsets = [0, 13], sizes = [1, 1], strides = [1, 1]} : vector<1x16xf32> to vector<1x1xf32>
    %248 = vector.shape_cast %247 : vector<1x1xf32> to vector<1x1x1xf32>
    %249 = vector.broadcast %248 : vector<1x1x1xf32> to vector<2x8x8xf32>
    %250 = arith.mulf %246, %249 : vector<2x8x8xf32>
    %251 = arith.addf %239, %250 : vector<2x8x8xf32>
    %252 = vector.extract_strided_slice %80 {offsets = [0, 0, 14], sizes = [2, 8, 1], strides = [1, 1, 1]} : vector<2x8x16xbf16> to vector<2x8x1xbf16>
    %253 = vector.extract_strided_slice %81 {offsets = [0, 14, 0], sizes = [2, 1, 8], strides = [1, 1, 1]} : vector<2x16x8xbf16> to vector<2x1x8xbf16>
    %254 = vector.broadcast %252 : vector<2x8x1xbf16> to vector<2x8x8xbf16>
    %255 = vector.broadcast %253 : vector<2x1x8xbf16> to vector<2x8x8xbf16>
    %256 = arith.addf %254, %255 : vector<2x8x8xbf16>
    %257 = math.tanh %256 : vector<2x8x8xbf16>
    %258 = arith.extf %257 : vector<2x8x8xbf16> to vector<2x8x8xf32>
    %259 = vector.extract_strided_slice %82 {offsets = [0, 14], sizes = [1, 1], strides = [1, 1]} : vector<1x16xf32> to vector<1x1xf32>
    %260 = vector.shape_cast %259 : vector<1x1xf32> to vector<1x1x1xf32>
    %261 = vector.broadcast %260 : vector<1x1x1xf32> to vector<2x8x8xf32>
    %262 = arith.mulf %258, %261 : vector<2x8x8xf32>
    %263 = arith.addf %251, %262 : vector<2x8x8xf32>
    %264 = vector.extract_strided_slice %80 {offsets = [0, 0, 15], sizes = [2, 8, 1], strides = [1, 1, 1]} : vector<2x8x16xbf16> to vector<2x8x1xbf16>
    %265 = vector.extract_strided_slice %81 {offsets = [0, 15, 0], sizes = [2, 1, 8], strides = [1, 1, 1]} : vector<2x16x8xbf16> to vector<2x1x8xbf16>
    %266 = vector.broadcast %264 : vector<2x8x1xbf16> to vector<2x8x8xbf16>
    %267 = vector.broadcast %265 : vector<2x1x8xbf16> to vector<2x8x8xbf16>
    %268 = arith.addf %266, %267 : vector<2x8x8xbf16>
    %269 = math.tanh %268 : vector<2x8x8xbf16>
    %270 = arith.extf %269 : vector<2x8x8xbf16> to vector<2x8x8xf32>
    %271 = vector.extract_strided_slice %82 {offsets = [0, 15], sizes = [1, 1], strides = [1, 1]} : vector<1x16xf32> to vector<1x1xf32>
    %272 = vector.shape_cast %271 : vector<1x1xf32> to vector<1x1x1xf32>
    %273 = vector.broadcast %272 : vector<1x1x1xf32> to vector<2x8x8xf32>
    %274 = arith.mulf %270, %273 : vector<2x8x8xf32>
    %275 = arith.addf %263, %274 : vector<2x8x8xf32>
    %c0_38 = arith.constant 0 : index
    %c0_39 = arith.constant 0 : index
    %276 = vector.load %arg11[%c0_38, %c0_39] : memref<1x1xf32, #tpu.memory_space<vmem>>, vector<1x1xf32>
    %277 = vector.shape_cast %276 : vector<1x1xf32> to vector<1x1x1xf32>
    %278 = vector.broadcast %277 : vector<1x1x1xf32> to vector<2x8x8xf32>
    %279 = arith.addf %275, %278 : vector<2x8x8xf32>
    %280 = arith.negf %279 : vector<2x8x8xf32>
    %281 = math.exp %280 : vector<2x8x8xf32>
    %cst_40 = arith.constant 1.000000e+00 : f32
    %282 = vector.broadcast %cst_40 : f32 to vector<2x8x8xf32>
    %283 = arith.addf %282, %281 : vector<2x8x8xf32>
    %284 = arith.divf %282, %283 : vector<2x8x8xf32>
    %cst_41 = arith.constant 1.000000e+00 : f32
    %285 = vector.broadcast %cst_41 : f32 to vector<2x8x8xf32>
    %286 = arith.subf %285, %7 : vector<2x8x8xf32>
    %287 = arith.mulf %284, %286 : vector<2x8x8xf32>
    %288 = vector.broadcast %2 : vector<2x8x1xf32> to vector<2x8x8xf32>
    %289 = arith.mulf %287, %288 : vector<2x8x8xf32>
    %cst_42 = arith.constant dense<0.000000e+00> : vector<2x8xf32>
    %290 = vector.multi_reduction <add>, %289, %cst_42 [2] : vector<2x8x8xf32> to vector<2x8xf32>
    %291 = vector.shape_cast %290 : vector<2x8xf32> to vector<2x8x1xf32>
    %cst_43 = arith.constant dense<0.000000e+00> : vector<2x8xf32>
    %292 = vector.multi_reduction <add>, %289, %cst_43 [1] : vector<2x8x8xf32> to vector<2x8xf32>
    %293 = arith.extf %0 : vector<2x8x32xbf16> to vector<2x8x32xf32>
    %294 = vector.broadcast %291 : vector<2x8x1xf32> to vector<2x8x32xf32>
    %295 = arith.mulf %294, %293 : vector<2x8x32xf32>
    %cst_44 = arith.constant dense<0.000000e+00> : vector<2x32xf32>
    %296 = vector.multi_reduction <add>, %295, %cst_44 [1] : vector<2x8x32xf32> to vector<2x32xf32>
    %297 = vector.shape_cast %292 : vector<2x8xf32> to vector<2x8x1xf32>
    %298 = arith.extf %1 : vector<2x8x32xbf16> to vector<2x8x32xf32>
    %299 = vector.broadcast %297 : vector<2x8x1xf32> to vector<2x8x32xf32>
    %300 = arith.mulf %299, %298 : vector<2x8x32xf32>
    %cst_45 = arith.constant dense<0.000000e+00> : vector<2x32xf32>
    %301 = vector.multi_reduction <add>, %300, %cst_45 [1] : vector<2x8x32xf32> to vector<2x32xf32>
    %302 = arith.addf %296, %301 : vector<2x32xf32>
    %c0_46 = arith.constant 0 : index
    %c0_47 = arith.constant 0 : index
    %303 = vector.load %arg12[%c0_46, %c0_47] : memref<1x32xf32, #tpu.memory_space<vmem>>, vector<1x32xf32>
    %304 = vector.broadcast %303 : vector<1x32xf32> to vector<2x32xf32>
    %305 = arith.mulf %302, %304 : vector<2x32xf32>
    %cst_48 = arith.constant dense<0.000000e+00> : vector<2xf32>
    %306 = vector.multi_reduction <add>, %305, %cst_48 [1] : vector<2x32xf32> to vector<2xf32>
    %307 = vector.shape_cast %306 : vector<2xf32> to vector<2x1xf32>
    %c0_49 = arith.constant 0 : index
    %c0_50 = arith.constant 0 : index
    %308 = vector.load %arg13[%c0_49, %c0_50] : memref<1x1xf32, #tpu.memory_space<vmem>>, vector<1x1xf32>
    %309 = vector.broadcast %308 : vector<1x1xf32> to vector<2x1xf32>
    %310 = arith.addf %307, %309 : vector<2x1xf32>
    %311 = vector.broadcast %303 : vector<1x32xf32> to vector<2x32xf32>
    %312 = arith.mulf %65, %311 : vector<2x32xf32>
    %cst_51 = arith.constant dense<0.000000e+00> : vector<2xf32>
    %313 = vector.multi_reduction <add>, %312, %cst_51 [1] : vector<2x32xf32> to vector<2xf32>
    %314 = vector.shape_cast %313 : vector<2xf32> to vector<2x1xf32>
    %c0_52 = arith.constant 0 : index
    %c0_53 = arith.constant 0 : index
    %315 = vector.load %arg13[%c0_52, %c0_53] : memref<1x1xf32, #tpu.memory_space<vmem>>, vector<1x1xf32>
    %316 = vector.broadcast %315 : vector<1x1xf32> to vector<2x1xf32>
    %317 = arith.addf %314, %316 : vector<2x1xf32>
    %cst_54 = arith.constant dense<0.000000e+00> : vector<2x1xf32>
    %318 = vector.multi_reduction <add>, %9, %cst_54 [1] : vector<2x8x1xf32> to vector<2x1xf32>
    %cst_55 = arith.constant 0.000000e+00 : f32
    %319 = vector.broadcast %cst_55 : f32 to vector<2x1xf32>
    %320 = arith.cmpf oeq, %318, %319 : vector<2x1xf32>
    %cst_56 = arith.constant -1.000000e+09 : f32
    %321 = vector.broadcast %cst_56 : f32 to vector<2x1xf32>
    %322 = arith.select %320, %321, %310 : vector<2x1xi1>, vector<2x1xf32>
    %323 = arith.maximumf %322, %317 : vector<2x1xf32>
    %324 = arith.subf %322, %323 : vector<2x1xf32>
    %325 = math.exp %324 : vector<2x1xf32>
    %326 = arith.subf %317, %323 : vector<2x1xf32>
    %327 = math.exp %326 : vector<2x1xf32>
    %328 = arith.addf %325, %327 : vector<2x1xf32>
    %329 = arith.divf %325, %328 : vector<2x1xf32>
    %330 = arith.divf %327, %328 : vector<2x1xf32>
    %331 = vector.broadcast %329 : vector<2x1xf32> to vector<2x32xf32>
    %332 = arith.mulf %331, %302 : vector<2x32xf32>
    %333 = vector.broadcast %330 : vector<2x1xf32> to vector<2x32xf32>
    %334 = arith.mulf %333, %65 : vector<2x32xf32>
    %335 = arith.addf %332, %334 : vector<2x32xf32>
    %336 = arith.truncf %335 : vector<2x32xf32> to vector<2x32xbf16>
    %c0_57 = arith.constant 0 : index
    %c0_58 = arith.constant 0 : index
    %337 = vector.load %arg14[%c0_57, %c0_58] : memref<32x16xbf16, #tpu.memory_space<vmem>>, vector<32x16xbf16>
    %cst_59 = arith.constant dense<0.000000e+00> : vector<2x16xf32>
    %338 = tpu.matmul %336, %337, %cst_59 {dimension_numbers = #tpu.dot_dimension_numbers<[1], [0], [0], [1], [0, 0, 1, 1], [], []>} : vector<2x32xbf16>, vector<32x16xbf16>, vector<2x16xf32> -> vector<2x16xf32>
    %c0_60 = arith.constant 0 : index
    %c0_61 = arith.constant 0 : index
    %339 = vector.load %arg15[%c0_60, %c0_61] : memref<1x16xf32, #tpu.memory_space<vmem>>, vector<1x16xf32>
    %340 = vector.broadcast %339 : vector<1x16xf32> to vector<2x16xf32>
    %341 = arith.addf %338, %340 : vector<2x16xf32>
    %cst_62 = arith.constant 0.000000e+00 : f32
    %342 = vector.broadcast %cst_62 : f32 to vector<2x16xf32>
    %343 = arith.maximumf %341, %342 : vector<2x16xf32>
    %344 = arith.truncf %343 : vector<2x16xf32> to vector<2x16xbf16>
    %c0_63 = arith.constant 0 : index
    %c0_64 = arith.constant 0 : index
    %345 = vector.load %arg16[%c0_63, %c0_64] : memref<16x2xbf16, #tpu.memory_space<vmem>>, vector<16x2xbf16>
    %cst_65 = arith.constant dense<0.000000e+00> : vector<2x2xf32>
    %346 = tpu.matmul %344, %345, %cst_65 {dimension_numbers = #tpu.dot_dimension_numbers<[1], [0], [0], [1], [0, 0, 1, 1], [], []>} : vector<2x16xbf16>, vector<16x2xbf16>, vector<2x2xf32> -> vector<2x2xf32>
    %c0_66 = arith.constant 0 : index
    %c0_67 = arith.constant 0 : index
    %347 = vector.load %arg17[%c0_66, %c0_67] : memref<1x2xf32, #tpu.memory_space<vmem>>, vector<1x2xf32>
    %348 = vector.broadcast %347 : vector<1x2xf32> to vector<2x2xf32>
    %349 = arith.addf %346, %348 : vector<2x2xf32>
    %cst_68 = arith.constant 0.000000e+00 : f32
    %350 = vector.broadcast %cst_68 : f32 to vector<2x4xf32>
    %351 = tpu.concatenate %349, %329, %330, %350 in 1 : vector<2x2xf32>, vector<2x1xf32>, vector<2x1xf32>, vector<2x4xf32> -> vector<2x8xf32>
    %c0_69 = arith.constant 0 : index
    %c0_70 = arith.constant 0 : index
    %c0_71 = arith.constant 0 : index
    %352 = vector.load %arg18[%c0_69, %c0_70, %c0_71] : memref<1x2x8xf32, #tpu.memory_space<vmem>>, vector<1x2x8xf32>
    %353 = vector.shape_cast %352 : vector<1x2x8xf32> to vector<2x8xf32>
    %354 = vector.shape_cast %351 : vector<2x8xf32> to vector<1x2x8xf32>
    tpu.vector_store %arg18[%c0_69, %c0_70, %c0_71], %354 {strides = array<i32>} : memref<1x2x8xf32, #tpu.memory_space<vmem>>, vector<1x2x8xf32>,
    return
  }
  func.func @transform_0(%arg0: i32) -> (i32, i32, i32) {
    %c0_i32 = arith.constant 0 : i32
    %c0_i32_0 = arith.constant 0 : i32
    %c0_i32_1 = arith.constant 0 : i32
    return %arg0, %c0_i32, %c0_i32_0 : i32, i32, i32
  }
  func.func @transform_1(%arg0: i32) -> (i32, i32, i32) {
    %c0_i32 = arith.constant 0 : i32
    %c0_i32_0 = arith.constant 0 : i32
    %c0_i32_1 = arith.constant 0 : i32
    return %arg0, %c0_i32, %c0_i32_0 : i32, i32, i32
  }
  func.func @transform_2(%arg0: i32) -> (i32, i32, i32) {
    %c0_i32 = arith.constant 0 : i32
    %c0_i32_0 = arith.constant 0 : i32
    %c0_i32_1 = arith.constant 0 : i32
    return %arg0, %c0_i32, %c0_i32_0 : i32, i32, i32
  }
  func.func @transform_3(%arg0: i32) -> (i32, i32) {
    %c0_i32 = arith.constant 0 : i32
    %c0_i32_0 = arith.constant 0 : i32
    %c0_i32_1 = arith.constant 0 : i32
    return %c0_i32, %c0_i32_0 : i32, i32
  }
  func.func @transform_4(%arg0: i32) -> (i32, i32) {
    %c0_i32 = arith.constant 0 : i32
    %c0_i32_0 = arith.constant 0 : i32
    %c0_i32_1 = arith.constant 0 : i32
    return %c0_i32, %c0_i32_0 : i32, i32
  }
  func.func @transform_5(%arg0: i32) -> (i32, i32) {
    %c0_i32 = arith.constant 0 : i32
    %c0_i32_0 = arith.constant 0 : i32
    %c0_i32_1 = arith.constant 0 : i32
    return %c0_i32, %c0_i32_0 : i32, i32
  }
  func.func @transform_6(%arg0: i32) -> (i32, i32) {
    %c0_i32 = arith.constant 0 : i32
    %c0_i32_0 = arith.constant 0 : i32
    %c0_i32_1 = arith.constant 0 : i32
    return %c0_i32, %c0_i32_0 : i32, i32
  }
  func.func @transform_7(%arg0: i32) -> (i32, i32) {
    %c0_i32 = arith.constant 0 : i32
    %c0_i32_0 = arith.constant 0 : i32
    %c0_i32_1 = arith.constant 0 : i32
    return %c0_i32, %c0_i32_0 : i32, i32
  }
  func.func @transform_8(%arg0: i32) -> (i32, i32) {
    %c0_i32 = arith.constant 0 : i32
    %c0_i32_0 = arith.constant 0 : i32
    %c0_i32_1 = arith.constant 0 : i32
    return %c0_i32, %c0_i32_0 : i32, i32
  }
  func.func @transform_9(%arg0: i32) -> (i32, i32) {
    %c0_i32 = arith.constant 0 : i32
    %c0_i32_0 = arith.constant 0 : i32
    %c0_i32_1 = arith.constant 0 : i32
    return %c0_i32, %c0_i32_0 : i32, i32
  }
  func.func @transform_10(%arg0: i32) -> (i32, i32) {
    %c0_i32 = arith.constant 0 : i32
    %c0_i32_0 = arith.constant 0 : i32
    %c0_i32_1 = arith.constant 0 : i32
    return %c0_i32, %c0_i32_0 : i32, i32
  }
  func.func @transform_11(%arg0: i32) -> (i32, i32) {
    %c0_i32 = arith.constant 0 : i32
    %c0_i32_0 = arith.constant 0 : i32
    %c0_i32_1 = arith.constant 0 : i32
    return %c0_i32, %c0_i32_0 : i32, i32
  }
  func.func @transform_12(%arg0: i32) -> (i32, i32) {
    %c0_i32 = arith.constant 0 : i32
    %c0_i32_0 = arith.constant 0 : i32
    %c0_i32_1 = arith.constant 0 : i32
    return %c0_i32, %c0_i32_0 : i32, i32
  }
  func.func @transform_13(%arg0: i32) -> (i32, i32) {
    %c0_i32 = arith.constant 0 : i32
    %c0_i32_0 = arith.constant 0 : i32
    %c0_i32_1 = arith.constant 0 : i32
    return %c0_i32, %c0_i32_0 : i32, i32
  }
  func.func @transform_14(%arg0: i32) -> (i32, i32) {
    %c0_i32 = arith.constant 0 : i32
    %c0_i32_0 = arith.constant 0 : i32
    %c0_i32_1 = arith.constant 0 : i32
    return %c0_i32, %c0_i32_0 : i32, i32
  }
  func.func @transform_15(%arg0: i32) -> (i32, i32) {
    %c0_i32 = arith.constant 0 : i32
    %c0_i32_0 = arith.constant 0 : i32
    %c0_i32_1 = arith.constant 0 : i32
    return %c0_i32, %c0_i32_0 : i32, i32
  }
  func.func @transform_16(%arg0: i32) -> (i32, i32) {
    %c0_i32 = arith.constant 0 : i32
    %c0_i32_0 = arith.constant 0 : i32
    %c0_i32_1 = arith.constant 0 : i32
    return %c0_i32, %c0_i32_0 : i32, i32
  }
  func.func @transform_17(%arg0: i32) -> (i32, i32, i32) {
    %c0_i32 = arith.constant 0 : i32
    %c0_i32_0 = arith.constant 0 : i32
    %c0_i32_1 = arith.constant 0 : i32
    return %arg0, %c0_i32, %c0_i32_0 : i32, i32, i32
  }
}

</mosaic_0001>

<bundles_post_ra>
// kernel: tpu_custom_call.1
= control target key start
LH: loop header
LB: loop body
LE: loop exit
PB: predicated region body
PF: predicated region fallthrough
CT: control target
= control target key end

     0   :  { %s2577_s0 = inlined_call_operand.vmem [shape: bf16[2,8,32], index: 0, kind: input, shape index: {}]   ;;  %s2578_s1 = inlined_call_operand.vmem [shape: bf16[2,8,32], index: 1, kind: input, shape index: {}]   ;;  %s2579_s2 = inlined_call_operand.vmem [shape: f32[2,8,1], index: 2, kind: input, shape index: {}]   ;;  %s2580_s3 = inlined_call_operand.vmem [shape: bf16[32,16], index: 3, kind: input, shape index: {}]   ;;  %s2581_s4 = inlined_call_operand.vmem [shape: f32[1,16], index: 4, kind: input, shape index: {}]   ;;  %s2582_s5 = inlined_call_operand.vmem [shape: f32[1,16], index: 5, kind: input, shape index: {}]   ;;  %s2583_s6 = inlined_call_operand.<no memory space> [shape: f32[1,1], index: 6, kind: input, shape index: {}]   ;;  %s2584_s7 = inlined_call_operand.vmem [shape: bf16[32,16], index: 7, kind: input, shape index: {}]   ;;  %s2585_s8 = inlined_call_operand.vmem [shape: f32[1,16], index: 8, kind: input, shape index: {}]   ;;  %s2586_s9 = inlined_call_operand.vmem [shape: f32[1,16], index: 9, kind: input, shape index: {}]   ;;  %s2587_s11 = inlined_call_operand.vmem [shape: f32[1,32], index: 11, kind: input, shape index: {}]   ;;  %s2588_s13 = inlined_call_operand.vmem [shape: bf16[32,16], index: 13, kind: input, shape index: {}]   ;;  %s2589_s14 = inlined_call_operand.vmem [shape: f32[1,16], index: 14, kind: input, shape index: {}]   ;;  %s2590_s15 = inlined_call_operand.vmem [shape: bf16[16,2], index: 15, kind: input, shape index: {}]   ;;  %s2591_s16 = inlined_call_operand.vmem [shape: f32[1,2], index: 16, kind: input, shape index: {}]   ;;  %s2592_s17 = inlined_call_operand.hbm [shape: f32[1,2,8], index: 17, kind: output, shape index: {}]   ;;  %s2593_s10 = inlined_call_operand.<no memory space> [shape: f32[1,1], index: 10, kind: input, shape index: {}]   ;;  %s2594_s12 = inlined_call_operand.<no memory space> [shape: f32[1,1], index: 12, kind: input, shape index: {}]  }
   0x1   :  { %2614 = sst [smem:[#allocation25_spill]] %s2577_s0  ;;  %v22_v0 = vstv %s2583_s6  ;;  %v24_v1 = vstv %s2593_s10  ;;  %v26_v2 = vstv %s2594_s12 }
   0x2   :  { %2615 = sst [smem:[#allocation26_spill]] %s2578_s1  ;;  %23 = vst [vmem:[#allocation2] sm:$0x1] %v22_v0 }
   0x3   :  { %25 = vst [vmem:[#allocation3] sm:$0x1] %v24_v1 }
   0x4   :  { %27 = vst [vmem:[#allocation4] sm:$0x1] %v26_v2 }
   0x5   :  { %s2616_s18 = sld [smem:[#allocation26_spill]]  ;;  %vm70_vm0 = vcmask 261120  }
   0xb   :  { %v66_v3 = vld [vmem:[%s2616_s18] sm:$0xf]  ;;  %v67_v4 = vld [vmem:[%s2616_s18 + $0x4] sm:$0xf] }
   0xc   :  { %v75_v5 = vsel %vm70_vm0, %v66_v3, 0  ;;  %v94_v6 = vsel %vm70_vm0, %v67_v4, 0 }
   0xd   :  { %84 = vmatpush.bf16.xpose.msra.mxu0 %v75_v5  ;;  %103 = vmatpush.bf16.xpose.msra.mxu1 %v94_v6 }
   0xe   :  { %28 = vsyncpa [#allocation6], 0  ;;  %s2617_s12 = sld [smem:[#allocation25_spill]]  ;;  %v2601_v11 = vmov 0.0   ;;  %vm115_vm5 = vcmask 64512   ;;  %vm157_vm6 = vcmask 1043456  }
   0xf   :  { %v158_v32 = vsel %vm157_vm6, %v66_v3, 0  ;;  %v176_v33 = vsel %vm157_vm6, %v67_v4, 0  ;;  %v1606_v34 = vld [vmem:[%s2584_s7 + $0x8] sm:$0xff]  ;;  %v1605_v35 = vld [vmem:[%s2584_s7] sm:$0xff]  ;;  %v1840_v38 = vmov 2   ;;  %v1841_v39 = vmov 1  }
  0x10   :  { %167 = vmatpush.bf16.msra.mxu2 %v158_v32  ;;  %185 = vmatpush.bf16.msra.mxu3 %v176_v33  ;;  %v2002_v37 = vld [vmem:[%s2586_s9] ss:$0 sm:$0xff]  ;;  %v1842_v44 = vmov 3   ;;  %v1843_v45 = vmov 6   ;;  %v1844_v49 = vmov 4   ;;  %v1845_v51 = vmov 5  }
  0x11   :  { %1632 = vset.pattern.permute.xlu0 %v1840_v38  ;;  %1631 = vset.pattern.permute.xlu1 %v1841_v39  ;;  %v1846_v52 = vmov 8   ;;  %v1604_v53 = vld [vmem:[%s2580_s3 + $0x8] sm:$0xff]  ;;  %v1847_v54 = vmov 7   ;;  %v1603_v55 = vld [vmem:[%s2580_s3] sm:$0xff]  ;;  %v1848_v56 = vmov 9   ;;  %v1849_v57 = vmov 10  }
  0x12   :  { %1644 = vset.pattern.permute.xlu2 %v1840_v38  ;;  %v1602_v58 = vld [vmem:[%s2616_s18] sm:$0xff]  ;;  %v1850_v59 = vmov 11   ;;  %v2599_v60 = vmov 0   ;;  %vm245_vm7 = vcmask 130048   ;;  %s1858_s29 = smov 3  }
  0x13   :  { %v1696_v6 = vld [vmem:[%s2585_s8] ss:$0 sm:$0xff] }
  0x14   :  { %v1970_v7 = vld [vmem:[%s2617_s12] sm:$0xf]  ;;  %v1975_v8 = vld [vmem:[%s2617_s12 + $0x4] sm:$0xf]  ;;  %366 = vmatpush.bf16.msrb.mxu3 %v1606_v34  ;;  %223 = vmatpush.bf16.msrb.mxu2 %v1604_v53 }
  0x15   :  { %2618 = vst [vmem:[#allocation8_spill] sm:$0xff] %v1970_v7  ;;  %1548 = vmatmul.msk.bf16.vlgmr.msra.gmra.mxu0 %vm70_vm0, %v1970_v7  ;;  %1549 = vmatmul.msk.bf16.vlgmr.msra.gmra.mxu1 %vm70_vm0, %v1975_v8  ;;  %v1601_v50 = vld [vmem:[%s2617_s12] sm:$0xff]  ;;  %v2597_v62 = vunpack.c.l.bf16 %v1970_v7  ;;  %v2598_v63 = vunpack.c.l.bf16 %v1975_v8  ;;  %s1859_s12 = smov [#allocation5]  }
  0x16   :  { %2619 = vst [vmem:[#allocation9_spill] sm:$0xff] %v1975_v8  ;;  %s1537_s20 = sshll.u32 %s1859_s12, 4  ;;  %s1538_s20 = int_to_ptr.vmem [resolvable:$true] %s1537_s20 }
  0x18   :  { %367 = vmatpush.bf16.msrb.mxu3 %v1605_v35  ;;  %224 = vmatpush.bf16.msrb.mxu2 %v1603_v55 }
  0x92   :  { %v86_v9 = vpop.f32.mrf.mxu0  ;;  %v105_v10 = vpop.f32.mrf.mxu1 }
  0x93   :  { %vm109_vm1 = vcmp.gt.f32.partialorder %v86_v9, 0.2  ;;  %vm110_vm2 = vcmp.gt.f32.partialorder %v105_v10, 0.2 }
  0x94   :  { %v1982_v12 = vsel %vm109_vm1, 1.0, %v2601_v11  ;;  %v1985_v13 = vsel %vm110_vm2, 1.0, %v2601_v11 }
  0x95   :  { %2620 = vst [vmem:[#allocation10_spill] sm:$0xff] %v1982_v12  ;;  %vm122_vm3 = vcmp.gt.f32.partialorder %v1982_v12, 0.0  ;;  %vm123_vm4 = vcmp.gt.f32.partialorder %v1985_v13, 0.0 }
  0x96   :  { %2621 = vst [vmem:[#allocation11_spill] sm:$0xff] %v1985_v13  ;;  %v124_v14 = vsel %vm122_vm3, %v86_v9, -1e+09  ;;  %v125_v17 = vsel %vm123_vm4, %v105_v10, -1e+09 }
  0x97   :  { %v126_v15 = vmul.f32 4.0, %v124_v14  ;;  %v127_v20 = vmul.f32 4.0, %v125_v17 }
  0x99   :  { %v128_v16 = vsel %vm115_vm5, %v126_v15, -inf  ;;  %v131_v21 = vsel %vm115_vm5, %v127_v20, -inf }
  0x9a   :  { %v107_v18 = vpop.f32.mrf.mxu1  ;;  %129 = vmax.xlane.f32.xlu0 %v128_v16  ;;  %v88_v19 = vpop.f32.mrf.mxu0 }
  0x9b   :  { %v1852_v18 = vmov 13   ;;  %v1853_v19 = vmov 12  }
  0xa2   :  { %132 = vmax.xlane.f32.xlu0 %v131_v21  ;;  %v1855_v21 = vmov 15  }
  0xb6   :  { %591 = vperm.xlu0 %1632, %v2002_v37  }
  0xbe   :  { %1633 = vset.pattern.permute.xlu0 %v1842_v44 }
  0xbf   :  { %633 = vperm.xlu0 %1633, %v2002_v37  }
  0xc7   :  { %1634 = vset.pattern.permute.xlu0 %v1844_v49 }
  0xc8   :  { %675 = vperm.xlu0 %1634, %v2002_v37  }
  0xd0   :  { %1635 = vset.pattern.permute.xlu0 %v1845_v51 }
  0xd1   :  { %717 = vperm.xlu0 %1635, %v2002_v37  }
  0xd9   :  { %1637 = vset.pattern.permute.xlu0 %v1847_v54 }
  0xda   :  { %801 = vperm.xlu0 %1637, %v2002_v37  }
  0xe2   :  { %1640 = vset.pattern.permute.xlu0 %v1849_v57 }
  0xe3   :  { %939 = vperm.xlu0 %1640, %v2002_v37  }
  0xeb   :  { %1641 = vset.pattern.permute.xlu0 %v2599_v60 }
  0xec   :  { %501 = vperm.xlu0 %1641, %v2002_v37  }
 0x10d   :  { %v130_v22 = vpop.xlane.xlu0 %129 }
 0x10e   :  { %v134_v23 = vsub.f32 %v126_v15, %v130_v22 }
 0x110   :  { %v136_v24 = vmul.f32 1.442695, %v134_v23  ;;  %v1697_v23 = vld [vmem:[#allocation3] ss:$0 sm:$0xff] }
 0x112   :  { %1705 = vpow2.f32 %v136_v24 }
 0x115   :  { %v133_v25 = vpop.xlane.xlu0 %132 }
 0x116   :  { %v135_v26 = vsub.f32 %v127_v20, %v133_v25  ;;  %v1854_v20 = vmov 14  }
 0x118   :  { %v1706_v27 = vpop.eup %1705  ;;  %v138_v28 = vmul.f32 1.442695, %v135_v26  ;;  %v1698_v26 = vld [vmem:[%s2581_s4] ss:$0 sm:$0xff] }
 0x119   :  { %v140_v29 = vsel %vm115_vm5, %v1706_v27, 0.0 }
 0x11a   :  { %1707 = vpow2.f32 %v138_v28  ;;  %141 = vadd.xlane.f32.xlu1 %v140_v29 }
 0x120   :  { %v1708_v30 = vpop.eup %1707 }
 0x121   :  { %v143_v31 = vsel %vm115_vm5, %v1708_v30, 0.0 }
 0x122   :  { %144 = vadd.xlane.f32.xlu1 %v143_v31 }
 0x13b   :  { %549 = vperm.xlu1 %1631, %v2002_v37  }
 0x143   :  { %1636 = vset.pattern.permute.xlu1 %v1843_v45 }
 0x144   :  { %759 = vperm.xlu1 %1636, %v2002_v37  }
 0x14c   :  { %1638 = vset.pattern.permute.xlu1 %v1846_v52 }
 0x14d   :  { %849 = vperm.xlu1 %1638, %v2002_v37  }
 0x155   :  { %1639 = vset.pattern.permute.xlu1 %v1848_v56 }
 0x156   :  { %897 = vperm.xlu1 %1639, %v2002_v37  }
 0x15e   :  { %1642 = vset.pattern.permute.xlu1 %v1850_v59 }
 0x15f   :  { %981 = vperm.xlu1 %1642, %v2002_v37  }
 0x167   :  { %1643 = vset.pattern.permute.xlu1 %v1841_v39 }
 0x18d   :  { %v142_v36 = vpop.xlane.xlu1 %141 }
 0x18e   :  { %1709 = vrcp.f32 %v142_v36 }
 0x194   :  { %v1710_v40 = vpop.eup %1709 }
 0x195   :  { %v145_v41 = vpop.xlane.xlu1 %144  ;;  %v148_v42 = vmul.f32 %v1710_v40, %v1706_v27 }
 0x196   :  { %1711 = vrcp.f32 %v145_v41 }
 0x197   :  { %v150_v43 = vpack.c.bf16 %v148_v42, %v148_v42 }
 0x199   :  { %1552 = vmatmul.msk.bf16.vlgmr.msra.gmra.mxu2 %vm115_vm5, %v150_v43 }
 0x19c   :  { %v1712_v46 = vpop.eup %1711 }
 0x19d   :  { %v149_v47 = vmul.f32 %v1712_v46, %v1708_v30  ;;  %v1699_v30 = vld [vmem:[%s2582_s5] ss:$0 sm:$0xff]  ;;  %s1539_s5 = sshll.u32 %s2592_s17, 4  ;;  %s1540_s5 = int_to_ptr.hbm [resolvable:$true] %s1539_s5 }
 0x19f   :  { %v151_v48 = vpack.c.bf16 %v149_v47, %v149_v47 }
 0x1a1   :  { %1553 = vmatmul.msk.bf16.vlgmr.msra.gmra.mxu3 %vm115_vm5, %v151_v48 }
 0x1ad   :  { %v2085_v22 = vpop.permute.xlu1 %549 }
 0x1b1   :  { %1583 = vmatmul.msk.bf16.vlgmr.msrb.gmra.mxu3 %vm70_vm0, %v1601_v50 }
 0x1b6   :  { %v2091_v24 = vpop.permute.xlu1 %759 }
 0x1bf   :  { %v2096_v25 = vpop.permute.xlu1 %849 }
 0x1c1   :  { %1584 = vmatmul.msk.bf16.gmra.mxu3 %vm70_vm0, %v1602_v58 }
 0x1c8   :  { %v2103_v29 = vpop.permute.xlu1 %897 }
 0x1c9   :  { %2624 = vst [vmem:[#allocation14_spill] sm:$0xff] %v2103_v29 }
 0x1d1   :  { %v2110_v36 = vpop.permute.xlu1 %981 }
 0x1d2   :  { %2625 = vst [vmem:[#allocation15_spill] sm:$0xff] %v2110_v36 }
 0x21c   :  { %v169_v61 = vpop.f32.mrf.mxu2 }
 0x21d   :  { %v2048_v2 = vadd.f32 %v169_v61, %v2597_v62 }
 0x21f   :  { %2622 = vst [vmem:[#allocation12_spill] sm:$0xff] %v2048_v2 }
 0x224   :  { %v171_v0 = vpop.f32.mrf.mxu2  ;;  %v187_v1 = vpop.f32.mrf.mxu3 }
 0x225   :  { %v2052_v3 = vadd.f32 %v187_v1, %v2598_v63 }
 0x227   :  { %2623 = vst [vmem:[#allocation13_spill] sm:$0xff] %v2052_v3  ;;  %v197_v4 = vpack.c.bf16 %v2052_v3, %v2048_v2 }
 0x229   :  { %1564 = vmatmul.msk.bf16.vlgmr.msrb.gmra.mxu2 %vm70_vm0, %v197_v4 }
 0x22c   :  { %v189_v5 = vpop.f32.mrf.mxu3 }
 0x234   :  { %v369_v9 = vpop.f32.mrf.mxu3 }
 0x235   :  { %v383_v10 = vadd.f32 %v1696_v6, %v369_v9 }
 0x237   :  { %v449_v14 = vpack.c.bf16 %v383_v10, %v383_v10 }
 0x239   :  { %557 = vperm.xlu2 %1644, %v449_v14   ;;  %509 = vperm.xlu1 %1643, %v449_v14  }
 0x23a   :  { %458 = vperm.xlu0 %1641, %v449_v14  }
 0x23c   :  { %v371_v15 = vpop.f32.mrf.mxu3 }
 0x23d   :  { %v384_v16 = vadd.f32 %v1696_v6, %v371_v15 }
 0x23f   :  { %v2064_v17 = vpack.c.bf16 %v384_v16, %v384_v16 }
 0x241   :  { %1645 = vset.pattern.permute.xlu2 %v1842_v44  ;;  %1648 = vset.pattern.permute.xlu1 %v1843_v45 }
 0x242   :  { %1647 = vset.pattern.permute.xlu0 %v1845_v51  ;;  %599 = vperm.xlu2 %1645, %v449_v14  }
 0x243   :  { %725 = vperm.xlu1 %1648, %v449_v14   ;;  %683 = vperm.xlu0 %1647, %v449_v14  }
 0x244   :  { %v374_v31 = vpop.f32.mrf.mxu3 }
 0x24a   :  { %1646 = vset.pattern.permute.xlu2 %v1844_v49 }
 0x24b   :  { %1649 = vset.pattern.permute.xlu1 %v1847_v54  ;;  %1666 = vset.pattern.permute.xlu0 %v1846_v52 }
 0x24c   :  { %641 = vperm.xlu2 %1646, %v449_v14   ;;  %767 = vperm.xlu1 %1649, %v449_v14  }
 0x24d   :  { %817 = vperm.xlu0 %1666, %v2064_v17  }
 0x254   :  { %1650 = vset.pattern.permute.xlu2 %v1846_v52  ;;  %1651 = vset.pattern.permute.xlu1 %v1848_v56 }
 0x255   :  { %1668 = vset.pattern.permute.xlu0 %v1849_v57  ;;  %809 = vperm.xlu2 %1650, %v449_v14  }
 0x256   :  { %857 = vperm.xlu1 %1651, %v449_v14   ;;  %913 = vperm.xlu0 %1668, %v2064_v17  }
 0x25d   :  { %1658 = vset.pattern.permute.xlu2 %v2599_v60 }
 0x25e   :  { %1652 = vset.pattern.permute.xlu1 %v1849_v57  ;;  %467 = vperm.xlu2 %1658, %v2064_v17  }
 0x25f   :  { %905 = vperm.xlu1 %1652, %v449_v14   ;;  %1675 = vset.pattern.permute.xlu0 %v1852_v18 }
 0x260   :  { %1065 = vperm.xlu0 %1675, %v2002_v37  }
 0x266   :  { %1659 = vset.pattern.permute.xlu2 %v1841_v39  ;;  %v376_v39 = vpop.f32.mrf.mxu3 }
 0x267   :  { %1653 = vset.pattern.permute.xlu1 %v1850_v59  ;;  %517 = vperm.xlu2 %1659, %v2064_v17   ;;  %v1679_v42 = vpack.i.bf16 %v374_v31, %v376_v39 }
 0x268   :  { %947 = vperm.xlu1 %1653, %v449_v14  }
 0x26f   :  { %1660 = vset.pattern.permute.xlu2 %v1840_v38 }
 0x270   :  { %1654 = vset.pattern.permute.xlu1 %v1853_v19  ;;  %565 = vperm.xlu2 %1660, %v2064_v17  }
 0x271   :  { %989 = vperm.xlu1 %1654, %v449_v14  }
 0x278   :  { %1661 = vset.pattern.permute.xlu2 %v1842_v44  ;;  %v116_v44 = vsel %vm115_vm5, %v1982_v12, 0.0 }
 0x279   :  { %1655 = vset.pattern.permute.xlu1 %v1852_v18  ;;  %607 = vperm.xlu2 %1661, %v2064_v17  }
 0x27a   :  { %1031 = vperm.xlu1 %1655, %v449_v14  }
 0x281   :  { %1664 = vset.pattern.permute.xlu2 %v1843_v45 }
 0x282   :  { %1656 = vset.pattern.permute.xlu1 %v1854_v20  ;;  %733 = vperm.xlu2 %1664, %v2064_v17  }
 0x283   :  { %1073 = vperm.xlu1 %1656, %v449_v14  }
 0x28a   :  { %1665 = vset.pattern.permute.xlu2 %v1847_v54 }
 0x28b   :  { %1657 = vset.pattern.permute.xlu1 %v1855_v21  ;;  %775 = vperm.xlu2 %1665, %v2064_v17  }
 0x28c   :  { %1115 = vperm.xlu1 %1657, %v449_v14  }
 0x293   :  { %1670 = vset.pattern.permute.xlu2 %v1853_v19  ;;  %v558_v48 = vpop.permute.xlu2 %557 }
 0x294   :  { %1662 = vset.pattern.permute.xlu1 %v1844_v49  ;;  %997 = vperm.xlu2 %1670, %v2064_v17   ;;  %v2130_v49 = vpop.permute.xlu0 %591 }
 0x295   :  { %649 = vperm.xlu1 %1662, %v2064_v17  }
 0x29c   :  { %1678 = vset.pattern.permute.xlu2 %v2599_v60  ;;  %v2134_v52 = vpop.permute.xlu0 %633 }
 0x29d   :  { %1663 = vset.pattern.permute.xlu1 %v1845_v51  ;;  %1160 = vperm.xlu2 %1678, %v1697_v23   ;;  %v600_v51 = vpop.permute.xlu2 %599 }
 0x29e   :  { %691 = vperm.xlu1 %1663, %v2064_v17  }
 0x2a4   :  { %v2138_v55 = vpop.permute.xlu0 %675 }
 0x2a6   :  { %1667 = vset.pattern.permute.xlu1 %v1848_v56  ;;  %v642_v54 = vpop.permute.xlu2 %641 }
 0x2a7   :  { %865 = vperm.xlu1 %1667, %v2064_v17  }
 0x2ab   :  { %v2115_v43 = vpop.permute.xlu1 %509 }
 0x2ac   :  { %v226_v27 = vpop.f32.mrf.mxu2  ;;  %v2142_v58 = vpop.permute.xlu0 %717 }
 0x2ad   :  { %v235_v28 = vadd.f32 %v1698_v26, %v226_v27 }
 0x2af   :  { %1713 = vtanh.f32 %v235_v28  ;;  %1669 = vset.pattern.permute.xlu1 %v1850_v59  ;;  %v810_v57 = vpop.permute.xlu2 %809 }
 0x2b0   :  { %955 = vperm.xlu1 %1669, %v2064_v17  }
 0x2b4   :  { %v228_v32 = vpop.f32.mrf.mxu2  ;;  %v2147_v0 = vpop.permute.xlu0 %801 }
 0x2b5   :  { %v1714_v33 = vpop.eup %1713  ;;  %v236_v34 = vadd.f32 %v1698_v26, %v228_v32  ;;  %v2120_v45 = vpop.permute.xlu1 %725 }
 0x2b6   :  { %v243_v35 = vmul.f32 %v1714_v33, %v1699_v30 }
 0x2b7   :  { %1715 = vtanh.f32 %v236_v34 }
 0x2b8   :  { %1671 = vset.pattern.permute.xlu1 %v1852_v18  ;;  %v246_v61 = vsel %vm245_vm7, %v243_v35, 0.0  ;;  %v69_v18 = vld [vmem:[%s2579_s2 + $0x8] sm:$0xff] }
 0x2b9   :  { %1039 = vperm.xlu1 %1671, %v2064_v17  }
 0x2bc   :  { %v2151_v5 = vpop.permute.xlu0 %939 }
 0x2bd   :  { %v1716_v38 = vpop.eup %1715 }
 0x2be   :  { %v244_v40 = vmul.f32 %v1716_v38, %v1699_v30  ;;  %v2124_v46 = vpop.permute.xlu1 %767  ;;  %v1856_v30 = vmov 839922192  }
 0x2bf   :  { %v462_v31 = vunpack.c.l.s4 %v1856_v30 }
 0x2c0   :  { %v249_v41 = vsel %vm245_vm7, %v244_v40, 0.0 }
 0x2c1   :  { %1672 = vset.pattern.permute.xlu1 %v1854_v20  ;;  %250 = vadd.xlane.f32.xlu0 %v249_v41  ;;  %v2171_v32 = vunpack.c.0.s8 %v462_v31 }
 0x2c2   :  { %1081 = vperm.xlu1 %1672, %v2064_v17  }
 0x2c3   :  { %1680 = vxpose.xlu2.b32.start.end [1/1] (short) (narrow) %v1679_v42, 16  ;;  %v563_v35 = vperm.slane %v558_v48, %v2171_v32  ;;  %v605_v38 = vperm.slane %v600_v51, %v2171_v32  ;;  %v647_v39 = vperm.slane %v642_v54, %v2171_v32  ;;  %v515_v40 = vperm.slane %v2115_v43, %v2171_v32 }
 0x2c4   :  { %v2155_v10 = vpop.permute.xlu0 %501  ;;  %v2190_v48 = vsel %vm115_vm5, %v1985_v13, 0.0  ;;  %v731_v43 = vperm.slane %v2120_v45, %v2171_v32 }
 0x2c5   :  { %v2192_v51 = vunpack.c.l.bf16 %v647_v39  ;;  %v2194_v54 = vunpack.c.l.bf16 %v515_v40 }
 0x2c8   :  { %v2127_v47 = vpop.permute.xlu1 %857 }
 0x2c9   :  { %117 = vadd.xlane.f32.xlu0 %v116_v44  ;;  %v2183_v44 = vunpack.c.l.bf16 %v563_v35  ;;  %v863_v39 = vperm.slane %v2127_v47, %v2171_v32 }
 0x2ca   :  { %1673 = vset.pattern.permute.xlu1 %v1855_v21 }
 0x2cb   :  { %1123 = vperm.xlu1 %1673, %v2064_v17  }
 0x2cc   :  { %v459_v16 = vpop.permute.xlu0 %458 }
 0x2cd   :  { %v464_v42 = vperm.slane %v459_v16, %v2171_v32 }
 0x2cf   :  { %v2199_v16 = vunpack.c.l.bf16 %v464_v42 }
 0x2d1   :  { %v2132_v50 = vpop.permute.xlu1 %905 }
 0x2d3   :  { %1674 = vset.pattern.permute.xlu1 %v1853_v19 }
 0x2d4   :  { %1023 = vperm.xlu1 %1674, %v2002_v37  }
 0x2da   :  { %v2136_v53 = vpop.permute.xlu1 %947 }
 0x2dc   :  { %1676 = vset.pattern.permute.xlu1 %v1854_v20  ;;  %v684_v20 = vpop.permute.xlu0 %683 }
 0x2dd   :  { %1107 = vperm.xlu1 %1676, %v2002_v37  }
 0x2e3   :  { %v2140_v56 = vpop.permute.xlu1 %989 }
 0x2e4   :  { %v818_v27 = vpop.permute.xlu0 %817 }
 0x2e5   :  { %1677 = vset.pattern.permute.xlu1 %v1855_v21  ;;  %v68_v21 = vld [vmem:[%s2579_s2] sm:$0xff]  ;;  %v823_v31 = vperm.slane %v818_v27, %v2171_v32  ;;  %v953_v27 = vperm.slane %v2136_v53, %v2171_v32  ;;  %v2237_v53 = vunpack.c.l.bf16 %v863_v39 }
 0x2e6   :  { %1149 = vperm.xlu1 %1677, %v2002_v37   ;;  %v468_v37 = vpop.permute.xlu2 %467 }
 0x2e7   :  { %v473_v30 = vperm.slane %v468_v37, %v2171_v32  ;;  %v2232_v63 = vunpack.c.l.bf16 %v823_v31 }
 0x2ec   :  { %v2144_v59 = vpop.permute.xlu1 %1031  ;;  %v914_v34 = vpop.permute.xlu0 %913 }
 0x2ed   :  { %v919_v45 = vperm.slane %v914_v34, %v2171_v32  ;;  %v2228_v34 = vunpack.c.l.bf16 %v473_v30  ;;  %v2247_v30 = vunpack.c.l.bf16 %v953_v27 }
 0x2ee   :  { %v518_v4 = vpop.permute.xlu2 %517 }
 0x2f4   :  { %v2212_v40 = vpop.permute.xlu0 %1065 }
 0x2f5   :  { %v2149_v1 = vpop.permute.xlu1 %1073  ;;  %2627 = vst [vmem:[#allocation17_spill] sm:$0xff] %v2212_v40 }
 0x2f6   :  { %v566_v9 = vpop.permute.xlu2 %565  ;;  %v1079_v39 = vperm.slane %v2149_v1, %v2171_v32 }
 0x2f8   :  { %v2279_v11 = vunpack.c.l.bf16 %v1079_v39 }
 0x2fa   :  { %2630 = vst [vmem:[#allocation20_spill] sm:$0xff] %v2279_v11 }
 0x2fe   :  { %v2153_v6 = vpop.permute.xlu1 %1115  ;;  %v608_v15 = vpop.permute.xlu2 %607 }
 0x2ff   :  { %v613_v37 = vperm.slane %v608_v15, %v2171_v32 }
 0x306   :  { %v734_v19 = vpop.permute.xlu2 %733 }
 0x307   :  { %v2157_v14 = vpop.permute.xlu1 %649  ;;  %v739_v47 = vperm.slane %v734_v19, %v2171_v32 }
 0x309   :  { %v2251_v31 = vunpack.c.l.bf16 %v739_v47 }
 0x30e   :  { %v776_v26 = vpop.permute.xlu2 %775 }
 0x310   :  { %247 = vadd.xlane.f32.xlu1 %v246_v61  ;;  %v2159_v17 = vpop.permute.xlu1 %691  ;;  %v2185_v61 = vunpack.c.l.bf16 %v605_v38  ;;  %v523_v38 = vperm.slane %v518_v4, %v2171_v32  ;;  %v2221_v4 = vunpack.c.l.bf16 %v731_v43  ;;  %v2239_v43 = vunpack.c.l.bf16 %v919_v45 }
 0x312   :  { %v2235_v15 = vunpack.c.l.bf16 %v523_v38 }
 0x316   :  { %v2173_v33 = vpop.permute.xlu2 %997 }
 0x317   :  { %v1003_v38 = vperm.slane %v2173_v33, %v2171_v32 }
 0x319   :  { %v2167_v23 = vpop.permute.xlu1 %865 }
 0x31a   :  { %v871_v33 = vperm.slane %v2167_v23, %v2171_v32 }
 0x31e   :  { %v2205_v35 = vpop.permute.xlu2 %1160 }
 0x31f   :  { %2626 = vst [vmem:[#allocation16_spill] sm:$0xff] %v2205_v35 }
 0x322   :  { %v2169_v28 = vpop.permute.xlu1 %955 }
 0x323   :  { %v961_v1 = vperm.slane %v2169_v28, %v2171_v32 }
 0x325   :  { %v2292_v39 = vunpack.c.l.bf16 %v961_v1 }
 0x32b   :  { %v2180_v41 = vpop.permute.xlu1 %1039 }
 0x334   :  { %1214 = vperm.xlu2 %1678, %v69_v18   ;;  %v815_v18 = vperm.slane %v810_v57, %v2171_v32  ;;  %v773_v57 = vperm.slane %v2124_v46, %v2171_v32  ;;  %v911_v46 = vperm.slane %v2132_v50, %v2171_v32  ;;  %v781_v50 = vperm.slane %v776_v26, %v2171_v32  ;;  %v1082_v19 = vpop.permute.xlu1 %1081 }
 0x335   :  { %v1087_v28 = vperm.slane %v1082_v19, %v2171_v32 }
 0x336   :  { %v2214_v42 = vunpack.c.l.bf16 %v815_v18  ;;  %v2230_v18 = vunpack.c.l.bf16 %v773_v57  ;;  %v2243_v60 = vunpack.c.l.bf16 %v911_v46  ;;  %v1037_v57 = vperm.slane %v2144_v59, %v2171_v32 }
 0x337   :  { %v2259_v45 = vunpack.c.l.bf16 %v781_v50  ;;  %v655_v46 = vperm.slane %v2157_v14, %v2171_v32  ;;  %v697_v59 = vperm.slane %v2159_v17, %v2171_v32  ;;  %v2275_v50 = vld [vmem:[#allocation2] ss:$0 sm:$0xff]  ;;  %v2277_v14 = vunpack.c.l.bf16 %v1003_v38  ;;  %v251_v17 = vpop.xlane.xlu0 %250 }
 0x338   :  { %2629 = vst [vmem:[#allocation19_spill] sm:$0xff] %v2275_v50  ;;  %v2290_v38 = vunpack.c.l.bf16 %v871_v33 }
 0x339   :  { %v2283_v3 = vunpack.c.l.bf16 %v655_v46  ;;  %v2285_v23 = vunpack.c.l.bf16 %v697_v59 }
 0x33c   :  { %1209 = vperm.xlu2 %1678, %v68_v21   ;;  %v689_v21 = vperm.slane %v684_v20, %v2171_v32  ;;  %v571_v20 = vperm.slane %v566_v9, %v2171_v32  ;;  %v995_v9 = vperm.slane %v2140_v56, %v2171_v32  ;;  %v2245_v56 = vunpack.c.l.bf16 %v613_v37 }
 0x33d   :  { %v2299_v46 = vpop.permute.xlu1 %1123 }
 0x33e   :  { %v2223_v62 = vunpack.c.l.bf16 %v689_v21  ;;  %v2241_v21 = vunpack.c.l.bf16 %v571_v20  ;;  %v2253_v26 = vunpack.c.l.bf16 %v995_v9  ;;  %v1121_v20 = vperm.slane %v2153_v6, %v2171_v32 }
 0x33f   :  { %v2267_v9 = vunpack.c.l.bf16 %v1037_v57  ;;  %v1045_v6 = vperm.slane %v2180_v41, %v2171_v32 }
 0x340   :  { %v2281_v57 = vunpack.c.l.bf16 %v1121_v20  ;;  %v2297_v20 = vadd.f32 %v2275_v50, %v251_v17 }
 0x341   :  { %2628 = vst [vmem:[#allocation18_spill] sm:$0xff] %v2267_v9  ;;  %v2294_v12 = vunpack.c.l.bf16 %v1045_v6 }
 0x342   :  { %2631 = vst [vmem:[#allocation21_spill] sm:$0xff] %v2281_v57 }
 0x343   :  { %2632 = vst [vmem:[#allocation22_spill] sm:$0xff] %v2294_v12 }
 0x344   :  { %2633 = vst [vmem:[#allocation23_spill] sm:$0xff] %v2297_v20 }
 0x35c   :  { %v1681_v37 = vpop.trf.xlu2 }
 0x35d   :  { %v1685_v27 = vunpack.i.h.bf16 %v1681_v37  ;;  %v1682_v47 = vunpack.i.l.bf16 %v1681_v37 }
 0x35f   :  { %v451_v2 = vpack.c.bf16 %v1685_v27, %v1685_v27  ;;  %v453_v37 = vpack.c.bf16 %v1682_v47, %v1682_v47 }
 0x361   :  { %v475_v7 = vpack.i.b16 %v451_v2, %v451_v2  ;;  %v524_v8 = vshrl.u32 %v451_v2, 16  ;;  %v2288_v41 = vpack.i.b16 %v453_v37, %v453_v37  ;;  %v528_v13 = vshrl.u32 %v453_v37, 16 }
 0x362   :  { %v2303_v2 = vunpack.c.l.bf16 %v1087_v28 }
 0x363   :  { %v477_v59 = vperm.slane %v475_v7, 0  ;;  %v2301_v27 = vpack.i.b16 %v524_v8, %v524_v8  ;;  %v572_v19 = vperm.slane %v475_v7, 1  ;;  %v656_v47 = vperm.slane %v475_v7, 2 }
 0x364   :  { %2634 = vst [vmem:[#allocation24_spill] sm:$0xff] %v2303_v2  ;;  %v740_v35 = vperm.slane %v475_v7, 3  ;;  %v481_v33 = vperm.slane %v2288_v41, 0  ;;  %v2306_v37 = vpack.i.b16 %v528_v13, %v528_v13  ;;  %v573_v7 = vperm.slane %v2288_v41, 1 }
 0x365   :  { %v484_v1 = vunpack.c.l.bf16 %v477_v59  ;;  %v527_v6 = vperm.slane %v2301_v27, 0  ;;  %v576_v40 = vunpack.c.l.bf16 %v572_v19  ;;  %v614_v17 = vperm.slane %v2301_v27, 1  ;;  %120 = vadd.xlane.f32.xlu2 %v2190_v48 }
 0x366   :  { %v660_v50 = vunpack.c.l.bf16 %v656_v47  ;;  %v698_v28 = vperm.slane %v2301_v27, 2  ;;  %v485_v59 = vunpack.c.l.bf16 %v481_v33  ;;  %v744_v11 = vunpack.c.l.bf16 %v740_v35 }
 0x367   :  { %v534_v20 = vunpack.c.l.bf16 %v527_v6  ;;  %v578_v13 = vadd.f32 %v576_v40, %v2183_v44  ;;  %v618_v57 = vunpack.c.l.bf16 %v614_v17  ;;  %v486_v12 = vadd.f32 %v484_v1, %v2199_v16 }
 0x368   :  { %v662_v2 = vadd.f32 %v660_v50, %v2192_v51  ;;  %v702_v19 = vunpack.c.l.bf16 %v698_v28  ;;  %v487_v47 = vadd.f32 %v485_v59, %v2228_v34  ;;  %v531_v8 = vperm.slane %v2306_v37, 0 }
 0x369   :  { %v580_v48 = vpack.c.bf16 %v578_v13, %v578_v13  ;;  %v620_v9 = vadd.f32 %v618_v57, %v2185_v61  ;;  %v488_v29 = vpack.c.bf16 %v486_v12, %v486_v12  ;;  %v536_v6 = vadd.f32 %v534_v20, %v2194_v54 }
 0x36a   :  { %v664_v36 = vpack.c.bf16 %v662_v2, %v662_v2  ;;  %v577_v44 = vunpack.c.l.bf16 %v573_v7  ;;  %v489_v17 = vpack.c.bf16 %v487_v47, %v487_v47  ;;  %v535_v51 = vunpack.c.l.bf16 %v531_v8 }
 0x36b   :  { %v582_v40 = vunpack.c.l.bf16 %v580_v48  ;;  %v622_v33 = vpack.c.bf16 %v620_v9, %v620_v9  ;;  %v490_v35 = vunpack.c.l.bf16 %v488_v29  ;;  %v538_v28 = vpack.c.bf16 %v536_v6, %v536_v6 }
 0x36c   :  { %v666_v50 = vunpack.c.l.bf16 %v664_v36  ;;  %v579_v16 = vadd.f32 %v577_v44, %v2241_v21  ;;  %v491_v57 = vunpack.c.l.bf16 %v489_v17  ;;  %v537_v34 = vadd.f32 %v535_v51, %v2235_v15 }
 0x36d   :  { %1717 = vtanh.f32 %v582_v40  ;;  %v624_v61 = vunpack.c.l.bf16 %v622_v33  ;;  %v540_v2 = vunpack.c.l.bf16 %v538_v28  ;;  %v615_v54 = vperm.slane %v2306_v37, 1 }
 0x36e   :  { %1719 = vtanh.f32 %v666_v50  ;;  %v581_v12 = vpack.c.bf16 %v579_v16, %v579_v16  ;;  %v539_v20 = vpack.c.bf16 %v537_v34, %v537_v34  ;;  %v657_v9 = vperm.slane %v2288_v41, 2 }
 0x36f   :  { %1721 = vtanh.f32 %v624_v61  ;;  %v699_v36 = vperm.slane %v2306_v37, 2  ;;  %v619_v1 = vunpack.c.l.bf16 %v615_v54  ;;  %v704_v21 = vadd.f32 %v702_v19, %v2223_v62 }
 0x370   :  { %1723 = vtanh.f32 %v490_v35  ;;  %v583_v29 = vunpack.c.l.bf16 %v581_v12  ;;  %v541_v8 = vunpack.c.l.bf16 %v539_v20  ;;  %v661_v7 = vunpack.c.l.bf16 %v657_v9 }
 0x371   :  { %1725 = vtanh.f32 %v491_v57  ;;  %v703_v15 = vunpack.c.l.bf16 %v699_v36  ;;  %v621_v13 = vadd.f32 %v619_v1, %v2245_v56  ;;  %v706_v59 = vpack.c.bf16 %v704_v21, %v704_v21 }
 0x372   :  { %1727 = vtanh.f32 %v540_v2  ;;  %v741_v48 = vperm.slane %v2288_v41, 3  ;;  %v782_v6 = vperm.slane %v2301_v27, 3  ;;  %v663_v44 = vadd.f32 %v661_v7, %v2283_v3 }
 0x373   :  { %v1718_v47 = vpop.eup %1717  ;;  %1729 = vtanh.f32 %v541_v8  ;;  %v705_v40 = vadd.f32 %v703_v15, %v2285_v23  ;;  %v623_v19 = vpack.c.bf16 %v621_v13, %v621_v13  ;;  %v708_v17 = vunpack.c.l.bf16 %v706_v59 }
 0x374   :  { %v1720_v33 = vpop.eup %1719  ;;  %v586_v62 = vpack.c.bf16 %v1718_v47, %v1718_v47  ;;  %1731 = vtanh.f32 %v583_v29  ;;  %v665_v35 = vpack.c.bf16 %v663_v44, %v663_v44  ;;  %v745_v28 = vunpack.c.l.bf16 %v741_v48  ;;  %v1686_v48 = vpop.trf.xlu2 }
 0x375   :  { %v1722_v51 = vpop.eup %1721  ;;  %v670_v50 = vpack.c.bf16 %v1720_v33, %v1720_v33  ;;  %v707_v56 = vpack.c.bf16 %v705_v40, %v705_v40  ;;  %v2635_v41 = vperm.slane %v2299_v46, %v2171_v32  ;;  %v625_v3 = vunpack.c.l.bf16 %v623_v19 }
 0x376   :  { %v1724_v16 = vpop.eup %1723  ;;  %v628_v61 = vpack.c.bf16 %v1722_v51, %v1722_v51  ;;  %v746_v23 = vadd.f32 %v744_v11, %v2221_v4  ;;  %v667_v2 = vunpack.c.l.bf16 %v665_v35  ;;  %1733 = vtanh.f32 %v708_v17 }
 0x377   :  { %v2336_v27 = vunpack.c.l.bf16 %v2635_v41  ;;  %v1726_v57 = vpop.eup %1725  ;;  %v494_v34 = vpack.c.bf16 %v1724_v16, %v1724_v16  ;;  %v709_v12 = vunpack.c.l.bf16 %v707_v56  ;;  %v588_v20 = vunpack.c.l.bf16 %v586_v62 }
 0x378   :  { %v1728_v54 = vpop.eup %1727  ;;  %v786_v9 = vunpack.c.l.bf16 %v782_v6  ;;  %v495_v36 = vpack.c.bf16 %v1726_v57, %v1726_v57  ;;  %1735 = vtanh.f32 %v625_v3  ;;  %v2339_v1 = vunpack.c.l.bf16 %v670_v50 }
 0x379   :  { %v1730_v29 = vpop.eup %1729  ;;  %v496_v32 = vunpack.c.l.bf16 %v494_v34  ;;  %v544_v46 = vpack.c.bf16 %v1728_v54, %v1728_v54  ;;  %v747_v21 = vadd.f32 %v745_v28, %v2251_v31  ;;  %v2342_v7 = vunpack.c.l.bf16 %v628_v61 }
 0x37a   :  { %v1732_v8 = vpop.eup %1731  ;;  %v545_v11 = vpack.c.bf16 %v1730_v29, %v1730_v29  ;;  %1737 = vtanh.f32 %v667_v2  ;;  %v748_v4 = vpack.c.bf16 %v746_v23, %v746_v23  ;;  %v497_v15 = vunpack.c.l.bf16 %v495_v36 }
 0x37b   :  { %v587_v13 = vpack.c.bf16 %v1732_v8, %v1732_v8  ;;  %1739 = vtanh.f32 %v709_v12  ;;  %v749_v59 = vpack.c.bf16 %v747_v21, %v747_v21  ;;  %v546_v47 = vunpack.c.l.bf16 %v544_v46 }
 0x37c   :  { %v2345_v6 = vmul.f32 %v2130_v49, %v588_v20  ;;  %v750_v44 = vunpack.c.l.bf16 %v748_v4  ;;  %v783_v40 = vperm.slane %v2306_v37, 3  ;;  %v2348_v33 = vpop.eup %1733  ;;  %v504_v31 = vmul.f32 %v2155_v10, %v496_v32 }
 0x37d   :  { %v547_v62 = vunpack.c.l.bf16 %v545_v11  ;;  %v751_v19 = vunpack.c.l.bf16 %v749_v59  ;;  %v788_v17 = vadd.f32 %v786_v9, %v2230_v18  ;;  %v589_v50 = vunpack.c.l.bf16 %v587_v13 }
 0x37e   :  { %v1736_v51 = vpop.eup %1735  ;;  %1741 = vtanh.f32 %v750_v44  ;;  %v787_v35 = vunpack.c.l.bf16 %v783_v40  ;;  %v1690_v56 = vunpack.i.h.bf16 %v1686_v48  ;;  %v2353_v28 = vmul.f32 %v2155_v10, %v497_v15 }
 0x37f   :  { %v629_v16 = vpack.c.bf16 %v1736_v51, %v1736_v51  ;;  %1743 = vtanh.f32 %v751_v19  ;;  %v790_v41 = vpack.c.bf16 %v788_v17, %v788_v17  ;;  %v552_v61 = vmul.f32 %v2085_v22, %v546_v47 }
 0x380   :  { %v1738_v37 = vpop.eup %1737  ;;  %v789_v3 = vadd.f32 %v787_v35, %v2259_v45  ;;  %v452_v23 = vpack.c.bf16 %v1690_v56, %v1690_v56  ;;  %v2358_v18 = vmul.f32 %v2085_v22, %v547_v62  ;;  %v1687_v2 = vunpack.i.l.bf16 %v1686_v48 }
 0x381   :  { %v1740_v57 = vpop.eup %1739  ;;  %v792_v34 = vunpack.c.l.bf16 %v790_v41  ;;  %v2361_v12 = vmul.f32 %v2130_v49, %v589_v50  ;;  %v2365_v9 = vunpack.c.l.bf16 %v629_v16  ;;  %v671_v36 = vpack.c.bf16 %v1738_v37, %v1738_v37 }
 0x382   :  { %v791_v10 = vpack.c.bf16 %v789_v3, %v789_v3  ;;  %v2363_v54 = vpack.i.b16 %v452_v23, %v452_v23  ;;  %v872_v20 = vshrl.u32 %v452_v23, 16  ;;  %v454_v29 = vpack.c.bf16 %v1687_v2, %v1687_v2 }
 0x383   :  { %1745 = vtanh.f32 %v792_v34  ;;  %v713_v21 = vpack.c.bf16 %v1740_v57, %v1740_v57  ;;  %v2378_v17 = vunpack.c.l.bf16 %v671_v36  ;;  %v554_v35 = vadd.f32 %v552_v61, %v504_v31 }
 0x384   :  { %v1742_v45 = vpop.eup %1741  ;;  %v827_v32 = vperm.slane %v2363_v54, 0  ;;  %v2368_v46 = vpack.i.b16 %v872_v20, %v872_v20  ;;  %v920_v22 = vperm.slane %v2363_v54, 1  ;;  %v793_v49 = vunpack.c.l.bf16 %v791_v10 }
 0x385   :  { %v1744_v8 = vpop.eup %1743  ;;  %v2371_v11 = vpack.i.b16 %v454_v29, %v454_v29  ;;  %v876_v4 = vshrl.u32 %v454_v29, 16  ;;  %v754_v15 = vpack.c.bf16 %v1742_v45, %v1742_v45  ;;  %v2382_v41 = vunpack.c.l.bf16 %v713_v21 }
 0x386   :  { %v834_v13 = vunpack.c.l.bf16 %v827_v32  ;;  %v875_v59 = vperm.slane %v2368_v46, 0  ;;  %v924_v48 = vunpack.c.l.bf16 %v920_v22  ;;  %v755_v47 = vpack.c.bf16 %v1744_v8, %v1744_v8 }
 0x387   :  { %v831_v44 = vperm.slane %v2371_v11, 0  ;;  %v2375_v40 = vpack.i.b16 %v876_v4, %v876_v4  ;;  %v921_v62 = vperm.slane %v2371_v11, 1  ;;  %v756_v19 = vunpack.c.l.bf16 %v754_v15 }
 0x388   :  { %v836_v51 = vadd.f32 %v834_v13, %v2214_v42  ;;  %v882_v50 = vunpack.c.l.bf16 %v875_v59  ;;  %v2384_v37 = vunpack.c.l.bf16 %v755_v47  ;;  %1747 = vtanh.f32 %v793_v49 }
 0x389   :  { %v1746_v56 = vpop.eup %1745  ;;  %v879_v16 = vperm.slane %v2375_v40, 0  ;;  %v835_v3 = vunpack.c.l.bf16 %v831_v44  ;;  %v2386_v23 = vunpack.c.l.bf16 %v921_v62  ;;  %v2390_v10 = vmul.f32 %v2091_v24, %v756_v19 }
 0x38a   :  { %v838_v57 = vpack.c.bf16 %v836_v51, %v836_v51  ;;  %v884_v34 = vadd.f32 %v882_v50, %v2237_v53  ;;  %v926_v42 = vadd.f32 %v924_v48, %v2243_v60  ;;  %v962_v31 = vperm.slane %v2368_v46, 1 }
 0x38b   :  { %v883_v2 = vunpack.c.l.bf16 %v879_v16  ;;  %v796_v61 = vpack.c.bf16 %v1746_v56, %v1746_v56  ;;  %v963_v29 = vperm.slane %v2375_v40, 1  ;;  %v1004_v21 = vperm.slane %v2363_v54, 2 }
 0x38c   :  { %v840_v20 = vunpack.c.l.bf16 %v838_v57  ;;  %v886_v36 = vpack.c.bf16 %v884_v34, %v884_v34  ;;  %v928_v32 = vpack.c.bf16 %v926_v42, %v926_v42  ;;  %v966_v22 = vunpack.c.l.bf16 %v962_v31 }
 0x38d   :  { %v885_v45 = vadd.f32 %v883_v2, %v2290_v38  ;;  %v967_v8 = vunpack.c.l.bf16 %v963_v29  ;;  %v1005_v49 = vperm.slane %v2371_v11, 2  ;;  %v2399_v60 = vadd.f32 %v835_v3, %v2232_v63 }
 0x38e   :  { %1749 = vtanh.f32 %v840_v20  ;;  %v888_v53 = vunpack.c.l.bf16 %v886_v36  ;;  %v1748_v4 = vpop.eup %1747  ;;  %v930_v13 = vunpack.c.l.bf16 %v928_v32  ;;  %v968_v59 = vadd.f32 %v966_v22, %v2247_v30 }
 0x38f   :  { %v887_v15 = vpack.c.bf16 %v885_v45, %v885_v45  ;;  %v969_v38 = vadd.f32 %v967_v8, %v2292_v39  ;;  %v1008_v48 = vunpack.c.l.bf16 %v1004_v21  ;;  %v1009_v47 = vunpack.c.l.bf16 %v1005_v49 }
 0x390   :  { %1751 = vtanh.f32 %v888_v53  ;;  %v798_v44 = vunpack.c.l.bf16 %v796_v61  ;;  %v970_v19 = vpack.c.bf16 %v968_v59, %v968_v59  ;;  %v555_v63 = vadd.f32 %v2358_v18, %v2353_v28 }
 0x391   :  { %v889_v62 = vunpack.c.l.bf16 %v887_v15  ;;  %1753 = vtanh.f32 %v930_v13  ;;  %v971_v51 = vpack.c.bf16 %v969_v38, %v969_v38  ;;  %v1010_v50 = vadd.f32 %v1008_v48, %v2253_v26 }
 0x392   :  { %v1011_v56 = vadd.f32 %v1009_v47, %v2277_v14  ;;  %v972_v16 = vunpack.c.l.bf16 %v970_v19  ;;  %v596_v30 = vadd.f32 %v2345_v6, %v554_v35  ;;  %v636_v39 = vmul.f32 %v2134_v52, %v2342_v7 }
 0x393   :  { %1755 = vtanh.f32 %v889_v62  ;;  %v973_v57 = vunpack.c.l.bf16 %v971_v51  ;;  %v1012_v34 = vpack.c.bf16 %v1010_v50, %v1010_v50  ;;  %v597_v42 = vadd.f32 %v2361_v12, %v555_v63 }
 0x394   :  { %v1750_v3 = vpop.eup %1749  ;;  %v1013_v2 = vpack.c.bf16 %v1011_v56, %v1011_v56  ;;  %v797_v31 = vpack.c.bf16 %v1748_v4, %v1748_v4  ;;  %1757 = vtanh.f32 %v972_v16  ;;  %v637_v26 = vmul.f32 %v2134_v52, %v2365_v9 }
 0x395   :  { %v638_v14 = vadd.f32 %v636_v39, %v596_v30  ;;  %1759 = vtanh.f32 %v973_v57  ;;  %v1014_v18 = vunpack.c.l.bf16 %v1012_v34  ;;  %v678_v6 = vmul.f32 %v2138_v55, %v2339_v1  ;;  %v2636_v30 = vld [vmem:[#allocation14_spill] sm:$0xff] }
 0x396   :  { %v1752_v28 = vpop.eup %1751  ;;  %v1015_v61 = vunpack.c.l.bf16 %v1013_v2  ;;  %v844_v35 = vpack.c.bf16 %v1750_v3, %v1750_v3  ;;  %v639_v36 = vadd.f32 %v637_v26, %v597_v42  ;;  %v679_v12 = vmul.f32 %v2138_v55, %v2378_v17 }
 0x397   :  { %v1754_v7 = vpop.eup %1753  ;;  %v892_v20 = vpack.c.bf16 %v1752_v28, %v1752_v28  ;;  %1761 = vtanh.f32 %v1014_v18  ;;  %v680_v45 = vadd.f32 %v678_v6, %v638_v14  ;;  %v712_v52 = vpack.c.bf16 %v2348_v33, %v2348_v33 }
 0x398   :  { %v934_v29 = vpack.c.bf16 %v1754_v7, %v1754_v7  ;;  %v763_v32 = vmul.f32 %v2091_v24, %v2384_v37  ;;  %v799_v22 = vunpack.c.l.bf16 %v797_v31  ;;  %1763 = vtanh.f32 %v1015_v61  ;;  %v1024_v61 = vpop.permute.xlu1 %1023 }
 0x399   :  { %v1756_v9 = vpop.eup %1755  ;;  %v681_v1 = vadd.f32 %v679_v12, %v639_v36  ;;  %v714_v8 = vunpack.c.l.bf16 %v712_v52  ;;  %v721_v49 = vmul.f32 %v2142_v58, %v2382_v41  ;;  %v846_v17 = vunpack.c.l.bf16 %v844_v35 }
 0x39a   :  { %v893_v21 = vpack.c.bf16 %v1756_v9, %v1756_v9  ;;  %v936_v53 = vunpack.c.l.bf16 %v934_v29  ;;  %v1758_v55 = vpop.eup %1757  ;;  %v894_v4 = vunpack.c.l.bf16 %v892_v20  ;;  %v804_v15 = vmul.f32 %v2147_v0, %v798_v44  ;;  %v2638_v29 = vld [vmem:[#allocation18_spill] sm:$0xff] }
 0x39b   :  { %v839_v33 = vpack.c.bf16 %v2399_v60, %v2399_v60  ;;  %v1760_v13 = vpop.eup %1759  ;;  %v976_v24 = vpack.c.bf16 %v1758_v55, %v1758_v55  ;;  %v720_v37 = vmul.f32 %v2142_v58, %v714_v8  ;;  %v723_v38 = vadd.f32 %v721_v49, %v681_v1  ;;  %v2639_v1 = vld [vmem:[#allocation22_spill] sm:$0xff] }
 0x39c   :  { %v895_v59 = vunpack.c.l.bf16 %v893_v21  ;;  %v977_v48 = vpack.c.bf16 %v1760_v13, %v1760_v13  ;;  %v927_v62 = vadd.f32 %v2386_v23, %v2239_v43  ;;  %v942_v41 = vmul.f32 %v2151_v5, %v936_v53  ;;  %v2640_v53 = vld [vmem:[#allocation20_spill] sm:$0xff] }
 0x39d   :  { %v841_v47 = vunpack.c.l.bf16 %v839_v33  ;;  %v1762_v19 = vpop.eup %1761  ;;  %v978_v51 = vunpack.c.l.bf16 %v976_v24  ;;  %v722_v50 = vadd.f32 %v720_v37, %v680_v45  ;;  %v765_v44 = vadd.f32 %v763_v32, %v723_v38  ;;  %v2642_v38 = vld [vmem:[#allocation21_spill] sm:$0xff] }
 0x39e   :  { %v805_v56 = vmul.f32 %v2147_v0, %v799_v22  ;;  %v2431_v60 = vpop.eup %1763  ;;  %v852_v63 = vmul.f32 %v2096_v25, %v846_v17  ;;  %v1018_v16 = vpack.c.bf16 %v1762_v19, %v1762_v19  ;;  %v929_v58 = vpack.c.bf16 %v927_v62, %v927_v62  ;;  %v2637_v0 = vld [vmem:[#allocation15_spill] sm:$0xff] }
 0x39f   :  { %1765 = vtanh.f32 %v841_v47  ;;  %v900_v39 = vmul.f32 %v2636_v30, %v894_v4  ;;  %v901_v3 = vmul.f32 %v2636_v30, %v895_v59  ;;  %v764_v43 = vadd.f32 %v2390_v10, %v722_v50 }
 0x3a0   :  { %v807_v23 = vadd.f32 %v805_v56, %v765_v44  ;;  %v979_v57 = vunpack.c.l.bf16 %v977_v48  ;;  %v1020_v34 = vunpack.c.l.bf16 %v1018_v16  ;;  %v931_v2 = vunpack.c.l.bf16 %v929_v58 }
 0x3a1   :  { %v1046_v42 = vperm.slane %v2368_v46, 2  ;;  %v984_v31 = vmul.f32 %v2637_v0, %v978_v51  ;;  %v806_v26 = vadd.f32 %v804_v15, %v764_v43  ;;  %v1047_v14 = vperm.slane %v2375_v40, 2 }
 0x3a2   :  { %v1088_v28 = vperm.slane %v2363_v54, 3  ;;  %v1019_v18 = vpack.c.bf16 %v2431_v60, %v2431_v60  ;;  %1767 = vtanh.f32 %v931_v2  ;;  %v1089_v10 = vperm.slane %v2371_v11, 3  ;;  %v2641_v11 = vld [vmem:[#allocation24_spill] sm:$0xff] }
 0x3a3   :  { %v1050_v6 = vunpack.c.l.bf16 %v1046_v42  ;;  %v854_v7 = vadd.f32 %v852_v63, %v806_v26  ;;  %v1026_v35 = vmul.f32 %v1024_v61, %v1020_v34  ;;  %v1051_v20 = vunpack.c.l.bf16 %v1047_v14  ;;  %v2643_v34 = vld [vmem:[#allocation23_spill] sm:$0xff] }
 0x3a4   :  { %v1092_v36 = vunpack.c.l.bf16 %v1088_v28  ;;  %v1093_v52 = vunpack.c.l.bf16 %v1089_v10  ;;  %v1130_v9 = vperm.slane %v2368_v46, 3  ;;  %v1131_v54 = vperm.slane %v2375_v40, 3 }
 0x3a5   :  { %v1766_v12 = vpop.eup %1765  ;;  %v1052_v45 = vadd.f32 %v1050_v6, %v2638_v29  ;;  %v902_v22 = vadd.f32 %v900_v39, %v854_v7  ;;  %v1053_v21 = vadd.f32 %v1051_v20, %v2639_v1  ;;  %v1021_v30 = vunpack.c.l.bf16 %v1019_v18 }
 0x3a6   :  { %v845_v32 = vpack.c.bf16 %v1766_v12, %v1766_v12  ;;  %v1094_v8 = vadd.f32 %v1092_v36, %v2640_v53  ;;  %v1095_v55 = vadd.f32 %v1093_v52, %v2641_v11  ;;  %v1134_v17 = vunpack.c.l.bf16 %v1130_v9 }
 0x3a7   :  { %v1054_v49 = vpack.c.bf16 %v1052_v45, %v1052_v45  ;;  %v1135_v4 = vunpack.c.l.bf16 %v1131_v54  ;;  %v944_v33 = vadd.f32 %v942_v41, %v902_v22  ;;  %v1055_v13 = vpack.c.bf16 %v1053_v21, %v1053_v21  ;;  %v2644_v45 = vld [vmem:[#allocation17_spill] sm:$0xff] }
 0x3a8   :  { %v847_v15 = vunpack.c.l.bf16 %v845_v32  ;;  %v1096_v59 = vpack.c.bf16 %v1094_v8, %v1094_v8  ;;  %v1768_v24 = vpop.eup %1767  ;;  %v1097_v46 = vpack.c.bf16 %v1095_v55, %v1095_v55  ;;  %v1136_v40 = vadd.f32 %v1134_v17, %v2642_v38 }
 0x3a9   :  { %v1056_v37 = vunpack.c.l.bf16 %v1054_v49  ;;  %v1137_v48 = vadd.f32 %v1135_v4, %v2336_v27  ;;  %v935_v62 = vpack.c.bf16 %v1768_v24, %v1768_v24  ;;  %v986_v19 = vadd.f32 %v984_v31, %v944_v33  ;;  %v2645_v24 = vld [vmem:[#allocation16_spill] sm:$0xff] }
 0x3aa   :  { %v853_v47 = vmul.f32 %v2096_v25, %v847_v15  ;;  %v1057_v51 = vunpack.c.l.bf16 %v1055_v13  ;;  %v1098_v50 = vunpack.c.l.bf16 %v1096_v59  ;;  %v1099_v44 = vunpack.c.l.bf16 %v1097_v46  ;;  %v1108_v25 = vpop.permute.xlu1 %1107 }
 0x3ab   :  { %1769 = vtanh.f32 %v1056_v37  ;;  %v1138_v56 = vpack.c.bf16 %v1136_v40, %v1136_v40  ;;  %v937_v41 = vunpack.c.l.bf16 %v935_v62  ;;  %v1028_v63 = vadd.f32 %v1026_v35, %v986_v19 }
 0x3ac   :  { %v855_v60 = vadd.f32 %v853_v47, %v807_v23  ;;  %1771 = vtanh.f32 %v1057_v51  ;;  %v1139_v16 = vpack.c.bf16 %v1137_v48, %v1137_v48  ;;  %v1566_v2 = vmul.f32 -1.442695, %v2643_v34  ;;  %v2463_v48 = vpop.permute.xlu2 %1214 }
 0x3ad   :  { %1773 = vtanh.f32 %v1098_v50  ;;  %v1140_v58 = vunpack.c.l.bf16 %v1138_v56  ;;  %v943_v27 = vmul.f32 %v2151_v5, %v937_v41  ;;  %v985_v42 = vmul.f32 %v2637_v0, %v979_v57 }
 0x3ae   :  { %v903_v39 = vadd.f32 %v901_v3, %v855_v60  ;;  %1775 = vtanh.f32 %v1099_v44  ;;  %v1141_v43 = vunpack.c.l.bf16 %v1139_v16  ;;  %v1027_v28 = vmul.f32 %v1024_v61, %v1021_v30  ;;  %v2646_v30 = vld [vmem:[#allocation19_spill] sm:$0xff] }
 0x3af   :  { %1777 = vtanh.f32 %v1140_v58  ;;  %v1253_v62 = vlaneseq }
 0x3b0   :  { %v945_v31 = vadd.f32 %v943_v27, %v903_v39  ;;  %1779 = vtanh.f32 %v1141_v43 }
 0x3b1   :  { %v1770_v23 = vpop.eup %1769  ;;  %1781 = vpow2.f32 %v1566_v2  ;;  %v1254_v50 = vshrl.u32 %v1253_v62, 7 }
 0x3b2   :  { %v1772_v26 = vpop.eup %1771  ;;  %v987_v14 = vadd.f32 %v985_v42, %v945_v31  ;;  %v1060_v6 = vpack.c.bf16 %v1770_v23, %v1770_v23  ;;  %v1150_v8 = vpop.permute.xlu1 %1149  ;;  %v2647_v31 = vld [vmem:[#allocation10_spill] sm:$0xff] }
 0x3b3   :  { %v1774_v10 = vpop.eup %1773  ;;  %v1061_v18 = vpack.c.bf16 %v1772_v26, %v1772_v26  ;;  %1691 = vset.pattern.permute.xlu0 %v1254_v50  ;;  %1692 = vset.pattern.permute.xlu1 %v1254_v50  ;;  %v1203_v23 = vsub.f32 1.0, %v2647_v31 }
 0x3b4   :  { %v1776_v3 = vpop.eup %1775  ;;  %v1029_v5 = vadd.f32 %v1027_v28, %v987_v14  ;;  %v1062_v7 = vunpack.c.l.bf16 %v1060_v6  ;;  %v1102_v35 = vpack.c.bf16 %v1774_v10, %v1774_v10  ;;  %v1210_v16 = vpop.permute.xlu2 %1209 }
 0x3b5   :  { %v1778_v20 = vpop.eup %1777  ;;  %v1063_v36 = vunpack.c.l.bf16 %v1061_v18  ;;  %v1103_v12 = vpack.c.bf16 %v1776_v3, %v1776_v3 }
 0x3b6   :  { %v1104_v29 = vunpack.c.l.bf16 %v1102_v35  ;;  %v1068_v57 = vmul.f32 %v2644_v45, %v1062_v7  ;;  %v1144_v0 = vpack.c.bf16 %v1778_v20, %v1778_v20  ;;  %v1780_v52 = vpop.eup %1779 }
 0x3b7   :  { %v1105_v9 = vunpack.c.l.bf16 %v1103_v12  ;;  %v1069_v54 = vmul.f32 %v2644_v45, %v1063_v36  ;;  %v1145_v22 = vpack.c.bf16 %v1780_v52, %v1780_v52  ;;  %v1782_v49 = vpop.eup %1781 }
 0x3b8   :  { %v1070_v61 = vadd.f32 %v1068_v57, %v1028_v63  ;;  %v1110_v32 = vmul.f32 %v1108_v25, %v1104_v29  ;;  %v1146_v1 = vunpack.c.l.bf16 %v1144_v0  ;;  %v2458_v13 = vadd.f32 1.0, %v1782_v49  ;;  %v2650_v0 = vld [vmem:[#allocation11_spill] sm:$0xff] }
 0x3b9   :  { %v1071_v21 = vadd.f32 %v1069_v54, %v1029_v5  ;;  %v1111_v53 = vmul.f32 %v1108_v25, %v1105_v9  ;;  %v1147_v55 = vunpack.c.l.bf16 %v1145_v22  ;;  %v1204_v52 = vsub.f32 1.0, %v2650_v0 }
 0x3ba   :  { %v1112_v11 = vadd.f32 %v1110_v32, %v1070_v61  ;;  %v1152_v17 = vmul.f32 %v1150_v8, %v1146_v1  ;;  %1783 = vrcp.f32 %v2458_v13  ;;  %v248_v41 = vpop.xlane.xlu1 %247  ;;  %vm286_vm8 = vweird.f32 %v2458_v13 }
 0x3bb   :  { %v1113_v4 = vadd.f32 %v1111_v53, %v1071_v21  ;;  %v1153_v15 = vmul.f32 %v1150_v8, %v1147_v55  ;;  %v256_v39 = vadd.f32 %v2646_v30, %v248_v41  ;;  %v290_v36 = vand.u32 2147483647, %v2458_v13 }
 0x3bc   :  { %v1154_v33 = vadd.f32 %v1152_v17, %v1112_v11  ;;  %v292_v12 = vand.u32 2147483648, %v2458_v13  ;;  %v2651_v21 = vmov 0.0  }
 0x3bd   :  { %v1155_v59 = vadd.f32 %v1153_v15, %v1113_v4  ;;  %v1565_v42 = vmul.f32 -1.442695, %v256_v39  ;;  %vm291_vm6 = vcmp.eq.f32.partialorder %v290_v36, 8.507059e+37 }
 0x3be   :  { %v1163_v37 = vadd.f32 %v2645_v24, %v1154_v33  ;;  %v293_v8 = vor.u32 1.1754944e-38, %v292_v12  ;;  %v1809_v33 = vld [vmem:[%s2579_s2 + $0x8] sm:$0xff] }
 0x3bf   :  { %v1164_v46 = vadd.f32 %v2645_v24, %v1155_v59 }
 0x3c0   :  { %v1585_v38 = vmul.f32 -1.442695, %v1163_v37  ;;  %v2465_v47 = vpop.eup %1783 }
 0x3c1   :  { %v1586_v40 = vmul.f32 -1.442695, %v1164_v46  ;;  %v282_v56 = vmul.f32 %v2465_v47, %v2458_v13  ;;  %vm287_vm11 = vweird.f32 %v2465_v47 }
 0x3c2   :  { %1785 = vpow2.f32 %v1585_v38  ;;  %vm2484_vm2 = vmor %vm286_vm8, %vm287_vm11 }
 0x3c3   :  { %1787 = vpow2.f32 %v1586_v40  ;;  %v283_v63 = vsub.f32 1.0, %v282_v56 }
 0x3c5   :  { %v284_v43 = vmul.f32 %v2465_v47, %v283_v63  ;;  %v2652_v63 = vmov 0  }
 0x3c7   :  { %v285_v18 = vadd.f32 %v2465_v47, %v284_v43  ;;  %v2501_v43 = vpop.xlane.xlu0 %117 }
 0x3c8   :  { %v1786_v19 = vpop.eup %1785 }
 0x3c9   :  { %v1171_v51 = vadd.f32 1.0, %v1786_v19  ;;  %v1788_v44 = vpop.eup %1787  ;;  %v289_v22 = vsel %vm2484_vm2, %v2465_v47, %v285_v18  ;;  %v1811_v18 = vld [vmem:[%s2616_s18 + $0x4] sm:$0xf] }
 0x3ca   :  { %v1172_v60 = vadd.f32 1.0, %v1788_v44  ;;  %v294_v11 = vsel %vm291_vm6, %v293_v8, %v289_v22  ;;  %v2657_v22 = vld [vmem:[#allocation13_spill] sm:$0xff] }
 0x3cb   :  { %1789 = vrcp.f32 %v1171_v51  ;;  %v1184_v26 = vand.u32 2147483648, %v1171_v51  ;;  %v1182_v6 = vand.u32 2147483647, %v1171_v51  ;;  %vm1178_vm10 = vweird.f32 %v1171_v51 }
 0x3cc   :  { %1791 = vrcp.f32 %v1172_v60  ;;  %v1199_v10 = vand.u32 2147483648, %v1172_v60  ;;  %v1197_v5 = vand.u32 2147483647, %v1172_v60  ;;  %vm1193_vm13 = vweird.f32 %v1172_v60 }
 0x3cd   :  { %v1185_v20 = vor.u32 1.1754944e-38, %v1184_v26  ;;  %vm1183_vm15 = vcmp.eq.f32.partialorder %v1182_v6, 8.507059e+37  ;;  %1793 = vpow2.f32 %v1565_v42  ;;  %v297_v13 = vmul.f32 %v1809_v33, %v294_v11  ;;  %v1810_v26 = vld [vmem:[%s2579_s2] sm:$0xff] }
 0x3ce   :  { %v1200_v9 = vor.u32 1.1754944e-38, %v1199_v10  ;;  %vm1198_vm4 = vcmp.eq.f32.partialorder %v1197_v5, 8.507059e+37 }
 0x3d1   :  { %v1790_v58 = vpop.eup %1789 }
 0x3d2   :  { %v1174_v27 = vmul.f32 %v1790_v58, %v1171_v51  ;;  %v1792_v25 = vpop.eup %1791  ;;  %vm1179_vm9 = vweird.f32 %v1790_v58 }
 0x3d3   :  { %v1189_v34 = vmul.f32 %v1792_v25, %v1172_v60  ;;  %vm1194_vm12 = vweird.f32 %v1792_v25  ;;  %vm1180_vm14 = vmor %vm1178_vm10, %vm1179_vm9  ;;  %v1794_v4 = vpop.eup %1793  ;;  %vm191_vm10 = vcmp.eq.f32.partialorder %v2501_v43, 0.0 }
 0x3d4   :  { %v1175_v2 = vsub.f32 1.0, %v1174_v27  ;;  %vm1195_vm3 = vmor %vm1193_vm13, %vm1194_vm12  ;;  %v264_v24 = vadd.f32 1.0, %v1794_v4  ;;  %vm1294_vm12 = vcmask 1041409   ;;  %vm1297_vm13 = vcmask 254976  }
 0x3d5   :  { %v1190_v14 = vsub.f32 1.0, %v1189_v34 }
 0x3d6   :  { %v1176_v28 = vmul.f32 %v1790_v58, %v1175_v2  ;;  %1795 = vrcp.f32 %v264_v24  ;;  %v277_v27 = vand.u32 2147483648, %v264_v24  ;;  %vm271_vm9 = vweird.f32 %v264_v24 }
 0x3d7   :  { %v1191_v3 = vmul.f32 %v1792_v25, %v1190_v14 }
 0x3d8   :  { %v1177_v7 = vadd.f32 %v1790_v58, %v1176_v28  ;;  %v2475_v35 = vpop.xlane.xlu2 %120  ;;  %v278_v42 = vor.u32 1.1754944e-38, %v277_v27 }
 0x3d9   :  { %v1192_v29 = vadd.f32 %v1792_v25, %v1191_v3  ;;  %vm192_vm1 = vcmp.eq.f32.partialorder %v2475_v35, 0.0  ;;  %v1266_v3 = vunpack.c.l.bf16 %v1811_v18 }
 0x3da   :  { %v1181_v45 = vsel %vm1180_vm14, %v1790_v58, %v1177_v7  ;;  %v1555_v53 = vsel %vm192_vm1, 1.0, %v2651_v21 }
 0x3db   :  { %v1186_v54 = vsel %vm1183_vm15, %v1185_v20, %v1181_v45  ;;  %v1196_v61 = vsel %vm1195_vm3, %v1792_v25, %v1192_v29  ;;  %v299_v17 = vsub.f32 1.0, %v1555_v53  ;;  %v275_v25 = vand.u32 2147483647, %v264_v24  ;;  %v2653_v20 = vld [vmem:[#allocation9_spill] sm:$0xff] }
 0x3dc   :  { %v1205_v32 = vmul.f32 %v1203_v23, %v1186_v54  ;;  %v1201_v1 = vsel %vm1198_vm4, %v1200_v9, %v1196_v61  ;;  %v1796_v51 = vpop.eup %1795  ;;  %v1554_v23 = vsel %vm191_vm10, 1.0, %v2651_v21  ;;  %v2654_v36 = vunpack.c.l.bf16 %v2653_v20 }
 0x3dd   :  { %v1206_v49 = vmul.f32 %v1204_v52, %v1201_v1  ;;  %v301_v37 = vmul.f32 %v299_v17, %v297_v13  ;;  %v267_v44 = vmul.f32 %v1796_v51, %v264_v24  ;;  %vm272_vm8 = vweird.f32 %v1796_v51  ;;  %v2655_v52 = vld [vmem:[#allocation8_spill] sm:$0xff] }
 0x3de   :  { %v1217_v38 = vmul.f32 %v1210_v16, %v1205_v32  ;;  %vm276_vm11 = vcmp.eq.f32.partialorder %v275_v25, 8.507059e+37  ;;  %v298_v28 = vsub.f32 1.0, %v1554_v23  ;;  %v2656_v9 = vunpack.c.l.bf16 %v2655_v52 }
 0x3df   :  { %v1218_v55 = vmul.f32 %v2463_v48, %v1206_v49  ;;  %309 = vperm.xlu2 %1678, %v301_v37   ;;  %v268_v60 = vsub.f32 1.0, %v267_v44 }
 0x3e0   :  { %v1219_v48 = vsel %vm115_vm5, %v1217_v38, 0.0 }
 0x3e1   :  { %v1222_v15 = vsel %vm115_vm5, %v1218_v55, 0.0  ;;  %v1225_v50 = vrot.slane %v1219_v48, 4  ;;  %v269_v58 = vmul.f32 %v1796_v51, %v268_v60  ;;  %vm273_vm5 = vmor %vm271_vm9, %vm272_vm8 }
 0x3e2   :  { %1223 = vadd.xlane.f32.xlu1 %v1222_v15  ;;  %v1231_v59 = vrot.slane %v1222_v15, 4 }
 0x3e3   :  { %v1226_v56 = vadd.f32 %v1225_v50, %v1219_v48  ;;  %v270_v30 = vadd.f32 %v1796_v51, %v269_v58 }
 0x3e4   :  { %v1232_v46 = vadd.f32 %v1231_v59, %v1222_v15  ;;  %v1812_v15 = vld [vmem:[%s2616_s18] sm:$0xf] }
 0x3e5   :  { %v1227_v41 = vrot.slane %v1226_v56, 2  ;;  %v274_v34 = vsel %vm273_vm5, %v1796_v51, %v270_v30  ;;  %v1265_v33 = vunpack.c.l.bf16 %v1812_v15 }
 0x3e6   :  { %v1233_v40 = vrot.slane %v1232_v46, 2  ;;  %v279_v31 = vsel %vm276_vm11, %v278_v42, %v274_v34  ;;  %v1701_v42 = vld [vmem:[%s2587_s11] ss:$0 sm:$0xff]  ;;  %s1857_s11 = smov 2  }
 0x3e7   :  { %v1228_v16 = vadd.f32 %v1227_v41, %v1226_v56  ;;  %v296_v14 = vmul.f32 %v1810_v26, %v279_v31 }
 0x3e8   :  { %v1234_v47 = vadd.f32 %v1233_v40, %v1232_v46 }
 0x3e9   :  { %v1229_v39 = vrot.slane %v1228_v16, 1  ;;  %v300_v6 = vmul.f32 %v298_v28, %v296_v14 }
 0x3ea   :  { %1220 = vadd.xlane.f32.xlu1 %v1219_v48  ;;  %v1235_v62 = vrot.slane %v1234_v47, 1 }
 0x3eb   :  { %v1230_v2 = vadd.f32 %v1229_v39, %v1228_v16  ;;  %v2658_v39 = vld [vmem:[#allocation12_spill] sm:$0xff] }
 0x3ec   :  { %v1236_v19 = vadd.f32 %v1235_v62, %v1234_v47 }
 0x3ee   :  { %1263 = vperm.xlu0 %1691, %v1236_v19  }
 0x3f6   :  { %1694 = vset.pattern.permute.xlu0 %v2652_v63 }
 0x403   :  { %1257 = vperm.xlu1 %1692, %v1230_v2  }
 0x40b   :  { %1693 = vset.pattern.permute.xlu1 %v2652_v63 }
 0x40c   :  { %304 = vperm.xlu1 %1693, %v300_v6  }
 0x439   :  { %v310_v61 = vpop.permute.xlu2 %309 }
 0x43a   :  { %v313_v1 = vmul.f32 %v310_v61, %v2657_v22  ;;  %v1317_v61 = vrot.slane %v2501_v43, 4 }
 0x43c   :  { %v321_v11 = vsel %vm70_vm0, %v313_v1, 0.0  ;;  %v1318_v22 = vadd.f32 %v1317_v61, %v2501_v43 }
 0x43d   :  { %v322_v4 = vrot.slane %v321_v11, 4 }
 0x43f   :  { %v323_v46 = vadd.f32 %v322_v4, %v321_v11  ;;  %v1702_v11 = vld [vmem:[#allocation4] ss:$0 sm:$0xff] }
 0x441   :  { %v324_v51 = vrot.slane %v323_v46, 2 }
 0x443   :  { %v325_v63 = vadd.f32 %v324_v51, %v323_v46 }
 0x445   :  { %v326_v31 = vrot.slane %v325_v63, 1 }
 0x447   :  { %v2535_v18 = vadd.f32 %v326_v31, %v325_v63 }
 0x455   :  { %v1224_v10 = vpop.xlane.xlu1 %1223 }
 0x456   :  { %v1238_v12 = vmul.f32 %v1224_v10, %v2654_v36 }
 0x458   :  { %v1246_v57 = vsel %vm70_vm0, %v1238_v12, 0.0 }
 0x459   :  { %v1247_v32 = vrot.slane %v1246_v57, 4 }
 0x45b   :  { %v1248_v8 = vadd.f32 %v1247_v32, %v1246_v57  ;;  %v1323_v32 = vrot.slane %v2475_v35, 4 }
 0x45d   :  { %v1221_v45 = vpop.xlane.xlu1 %1220  ;;  %v1249_v17 = vrot.slane %v1248_v8, 2  ;;  %v1324_v1 = vadd.f32 %v1323_v32, %v2475_v35 }
 0x45e   :  { %v1237_v54 = vmul.f32 %v1221_v45, %v2656_v9  ;;  %v1307_v45 = vmul.f32 %v1701_v42, %v2535_v18 }
 0x45f   :  { %v1250_v24 = vadd.f32 %v1249_v17, %v1248_v8 }
 0x460   :  { %v1264_v5 = vpop.permute.xlu0 %1263  ;;  %v1239_v53 = vsel %vm70_vm0, %v1237_v54, 0.0  ;;  %v1310_v52 = vrot.slane %v1307_v45, 7 }
 0x461   :  { %v1268_v7 = vmul.f32 %v1266_v3, %v1264_v5  ;;  %v1240_v49 = vrot.slane %v1239_v53, 4  ;;  %v1251_v62 = vrot.slane %v1250_v24, 1 }
 0x463   :  { %v1276_v29 = vsel %vm70_vm0, %v1268_v7, 0.0  ;;  %v1241_v13 = vadd.f32 %v1240_v49, %v1239_v53  ;;  %v1252_v60 = vadd.f32 %v1251_v62, %v1250_v24  ;;  %v1325_v53 = vrot.slane %v1324_v1, 2 }
 0x464   :  { %v1277_v0 = vrot.slane %v1276_v29, 4 }
 0x465   :  { %v1242_v40 = vrot.slane %v1241_v13, 2  ;;  %v1326_v49 = vadd.f32 %v1325_v53, %v1324_v1 }
 0x466   :  { %v1278_v21 = vadd.f32 %v1277_v0, %v1276_v29 }
 0x467   :  { %v1243_v50 = vadd.f32 %v1242_v40, %v1241_v13  ;;  %v1327_v4 = vrot.slane %v1326_v49, 1 }
 0x468   :  { %v1279_v55 = vrot.slane %v1278_v21, 2 }
 0x469   :  { %v1244_v16 = vrot.slane %v1243_v50, 1  ;;  %v1328_v13 = vadd.f32 %v1327_v4, %v1326_v49 }
 0x46a   :  { %v1280_v59 = vadd.f32 %v1279_v55, %v1278_v21  ;;  %v1319_v21 = vrot.slane %v1318_v22, 2 }
 0x46b   :  { %v1245_v26 = vadd.f32 %v1244_v16, %v1243_v50  ;;  %vm1330_vm15 = vcmp.eq.f32.partialorder %v1328_v13, 0.0  ;;  %v1608_v13 = vld [vmem:[%s2588_s13 + $0x8] sm:$0xff] }
 0x46c   :  { %v1281_v47 = vrot.slane %v1280_v59, 1  ;;  %v1320_v8 = vadd.f32 %v1319_v21, %v1318_v22  ;;  %1479 = vmatpush.bf16.msrb.mxu0 %v1608_v13 }
 0x46e   :  { %v1282_v44 = vadd.f32 %v1281_v47, %v1280_v59  ;;  %v1321_v55 = vrot.slane %v1320_v8, 1 }
 0x470   :  { %v2526_v25 = vadd.f32 %v1282_v44, %v1252_v60 }
 0x472   :  { %v1290_v28 = vmul.f32 %v1701_v42, %v2526_v25 }
 0x474   :  { %v1293_v7 = vrot.slane %v1290_v28, 7 }
 0x475   :  { %v1258_v37 = vpop.permute.xlu1 %1257 }
 0x476   :  { %v1267_v38 = vmul.f32 %v1265_v33, %v1258_v37  ;;  %v1322_v33 = vadd.f32 %v1321_v55, %v1320_v8 }
 0x478   :  { %v1269_v48 = vsel %vm70_vm0, %v1267_v38, 0.0  ;;  %vm1329_vm14 = vcmp.eq.f32.partialorder %v1322_v33, 0.0 }
 0x479   :  { %v1270_v19 = vrot.slane %v1269_v48, 4 }
 0x47b   :  { %v1271_v56 = vadd.f32 %v1270_v19, %v1269_v48 }
 0x47d   :  { %v1272_v41 = vrot.slane %v1271_v56, 2 }
 0x47e   :  { %v305_v58 = vpop.permute.xlu1 %304 }
 0x47f   :  { %v1273_v30 = vadd.f32 %v1272_v41, %v1271_v56  ;;  %v312_v27 = vmul.f32 %v305_v58, %v2658_v39 }
 0x481   :  { %v1274_v34 = vrot.slane %v1273_v30, 1  ;;  %v314_v2 = vsel %vm70_vm0, %v312_v27, 0.0 }
 0x482   :  { %v315_v23 = vrot.slane %v314_v2, 4 }
 0x483   :  { %v1275_v14 = vadd.f32 %v1274_v34, %v1273_v30 }
 0x484   :  { %v316_v6 = vadd.f32 %v315_v23, %v314_v2 }
 0x485   :  { %v2533_v10 = vadd.f32 %v1275_v14, %v1245_v26 }
 0x486   :  { %v317_v3 = vrot.slane %v316_v6, 2 }
 0x487   :  { %v1289_v5 = vmul.f32 %v1701_v42, %v2533_v10 }
 0x488   :  { %v318_v20 = vadd.f32 %v317_v3, %v316_v6 }
 0x489   :  { %v1295_v36 = vsel %vm1294_vm12, %v1293_v7, %v1289_v5 }
 0x48a   :  { %v319_v12 = vrot.slane %v318_v20, 1  ;;  %v1298_v29 = vsel %vm1297_vm13, %v1295_v36, 0.0 }
 0x48b   :  { %1299 = vadd.xlane.f32.xlu2 %v1298_v29 }
 0x48c   :  { %v2540_v57 = vadd.f32 %v319_v12, %v318_v20 }
 0x48e   :  { %v1306_v0 = vmul.f32 %v1701_v42, %v2540_v57 }
 0x490   :  { %v1311_v9 = vsel %vm1294_vm12, %v1310_v52, %v1306_v0 }
 0x491   :  { %v1313_v54 = vsel %vm1297_vm13, %v1311_v9, 0.0 }
 0x492   :  { %1314 = vadd.xlane.f32.xlu0 %v1313_v54 }
 0x4fe   :  { %v1300_v17 = vpop.xlane.xlu2 %1299 }
 0x4ff   :  { %v1305_v15 = vadd.f32 %v1702_v11, %v1300_v17 }
 0x501   :  { %v1332_v59 = vrot.slane %v1305_v15, 1  ;;  %v1335_v46 = vsel %vm1329_vm14, -1e+09, %v1305_v15 }
 0x503   :  { %v1336_v35 = vsel %vm1330_vm15, -1e+09, %v1332_v59  ;;  %v1607_v59 = vld [vmem:[%s2588_s13] sm:$0xff]  ;;  %vm1528_vm15 = vcmask 31744  }
 0x504   :  { %1480 = vmatpush.bf16.msrb.mxu0 %v1607_v59 }
 0x505   :  { %v1315_v24 = vpop.xlane.xlu0 %1314 }
 0x506   :  { %v1316_v37 = vadd.f32 %v1702_v11, %v1315_v24 }
 0x508   :  { %v1338_v43 = vrot.slane %v1316_v37, 1  ;;  %v1341_v38 = vmax.f32 %v1335_v46, %v1316_v37 }
 0x50a   :  { %v1342_v40 = vmax.f32 %v1336_v35, %v1338_v43  ;;  %v1343_v47 = vsub.f32 %v1335_v46, %v1341_v38  ;;  %v1432_v46 = vsel %vm1294_vm12, %v2535_v18, %v2540_v57 }
 0x50c   :  { %v1351_v48 = vrot.slane %v1342_v40, 7  ;;  %v1344_v62 = vsub.f32 %v1336_v35, %v1342_v40  ;;  %v1345_v50 = vmul.f32 1.442695, %v1343_v47 }
 0x50e   :  { %v1352_v19 = vsel %vm1294_vm12, %v1351_v48, %v1341_v38  ;;  %v1347_v44 = vmul.f32 1.442695, %v1344_v62 }
 0x50f   :  { %v1354_v51 = vsub.f32 %v1316_v37, %v1352_v19  ;;  %v1609_v37 = vld [vmem:[%s2590_s15] sm:$0xff] }
 0x510   :  { %1510 = vmatpush.bf16.msrb.mxu1 %v1609_v37 }
 0x511   :  { %v1355_v56 = vmul.f32 1.442695, %v1354_v51 }
 0x513   :  { %1797 = vpow2.f32 %v1355_v56 }
 0x514   :  { %1799 = vpow2.f32 %v1345_v50 }
 0x515   :  { %1801 = vpow2.f32 %v1347_v44 }
 0x519   :  { %v1798_v60 = vpop.eup %1797 }
 0x51a   :  { %v1800_v41 = vpop.eup %1799  ;;  %v1358_v63 = vrot.slane %v1798_v60, 1 }
 0x51b   :  { %v1802_v58 = vpop.eup %1801  ;;  %v1361_v16 = vadd.f32 %v1800_v41, %v1798_v60 }
 0x51c   :  { %v1362_v30 = vadd.f32 %v1802_v58, %v1358_v63 }
 0x51d   :  { %v1374_v53 = vand.u32 2147483648, %v1361_v16  ;;  %vm1368_vm11 = vweird.f32 %v1361_v16  ;;  %v1372_v49 = vand.u32 2147483647, %v1361_v16 }
 0x51e   :  { %1803 = vrcp.f32 %v1362_v30  ;;  %v1395_v39 = vrot.slane %v1362_v30, 7  ;;  %v1387_v26 = vand.u32 2147483647, %v1362_v30  ;;  %v1389_v14 = vand.u32 2147483648, %v1362_v30 }
 0x51f   :  { %1805 = vrcp.f32 %v1361_v16  ;;  %vm1383_vm2 = vweird.f32 %v1362_v30  ;;  %v1375_v55 = vor.u32 1.1754944e-38, %v1374_v53  ;;  %vm1373_vm14 = vcmp.eq.f32.partialorder %v1372_v49, 8.507059e+37 }
 0x520   :  { %v1396_v27 = vsel %vm1294_vm12, %v1395_v39, %v1361_v16  ;;  %vm1388_vm4 = vcmp.eq.f32.partialorder %v1387_v26, 8.507059e+37  ;;  %v1390_v20 = vor.u32 1.1754944e-38, %v1389_v14  ;;  %v1704_v39 = vld [vmem:[%s2591_s16] ss:$0 sm:$0xff] }
 0x521   :  { %1807 = vrcp.f32 %v1396_v27  ;;  %v1409_v0 = vand.u32 2147483648, %v1396_v27  ;;  %vm1403_vm8 = vweird.f32 %v1396_v27  ;;  %v1407_v54 = vand.u32 2147483647, %v1396_v27 }
 0x523   :  { %v1410_v22 = vor.u32 1.1754944e-38, %v1409_v0  ;;  %vm1408_vm5 = vcmp.eq.f32.partialorder %v1407_v54, 8.507059e+37 }
 0x524   :  { %v1804_v34 = vpop.eup %1803 }
 0x525   :  { %v1379_v2 = vmul.f32 %v1804_v34, %v1362_v30  ;;  %v1806_v42 = vpop.eup %1805  ;;  %vm1384_vm1 = vweird.f32 %v1804_v34 }
 0x526   :  { %v1364_v3 = vmul.f32 %v1806_v42, %v1361_v16  ;;  %vm1385_vm3 = vmor %vm1383_vm2, %vm1384_vm1  ;;  %vm1369_vm10 = vweird.f32 %v1806_v42 }
 0x527   :  { %v1380_v31 = vsub.f32 1.0, %v1379_v2  ;;  %v1808_v23 = vpop.eup %1807  ;;  %vm1370_vm13 = vmor %vm1368_vm11, %vm1369_vm10 }
 0x528   :  { %v1399_v6 = vmul.f32 %v1808_v23, %v1396_v27  ;;  %vm1404_vm6 = vweird.f32 %v1808_v23  ;;  %v1365_v29 = vsub.f32 1.0, %v1364_v3 }
 0x529   :  { %v1381_v28 = vmul.f32 %v1804_v34, %v1380_v31  ;;  %vm1405_vm9 = vmor %vm1403_vm8, %vm1404_vm6 }
 0x52a   :  { %v1400_v7 = vsub.f32 1.0, %v1399_v6  ;;  %v1366_v32 = vmul.f32 %v1806_v42, %v1365_v29 }
 0x52b   :  { %v1382_v5 = vadd.f32 %v1804_v34, %v1381_v28 }
 0x52c   :  { %v1401_v12 = vmul.f32 %v1808_v23, %v1400_v7  ;;  %v1367_v21 = vadd.f32 %v1806_v42, %v1366_v32 }
 0x52d   :  { %v1386_v36 = vsel %vm1385_vm3, %v1804_v34, %v1382_v5 }
 0x52e   :  { %v1391_v45 = vsel %vm1388_vm4, %v1390_v20, %v1386_v36  ;;  %v1402_v9 = vadd.f32 %v1808_v23, %v1401_v12  ;;  %v1371_v11 = vsel %vm1370_vm13, %v1806_v42, %v1367_v21 }
 0x52f   :  { %v1392_v52 = vmul.f32 %v1802_v58, %v1391_v45  ;;  %v1376_v17 = vsel %vm1373_vm14, %v1375_v55, %v1371_v11 }
 0x530   :  { %v1406_v61 = vsel %vm1405_vm9, %v1808_v23, %v1402_v9  ;;  %v1377_v4 = vmul.f32 %v1800_v41, %v1376_v17 }
 0x531   :  { %1420 = vperm.xlu1 %1693, %v1392_v52   ;;  %v1411_v1 = vsel %vm1408_vm5, %v1410_v22, %v1406_v61  ;;  %v1516_v15 = vrot.slane %v1392_v52, 7 }
 0x532   :  { %v1412_v8 = vmul.f32 %v1798_v60, %v1411_v1 }
 0x533   :  { %v1517_v33 = vsel %vm1294_vm12, %v1516_v15, %v1377_v4 }
 0x539   :  { %1427 = vperm.xlu1 %1693, %v1412_v8  }
 0x541   :  { %1415 = vperm.xlu1 %1693, %v1377_v4  }
 0x549   :  { %1518 = vrot.lane.b32.xlu1 %v1517_v33, %s1857_s11 }
 0x551   :  { %1521 = vrot.lane.b32.xlu1 %v1412_v8, %s1858_s29 }
 0x5a3   :  { %v1421_v24 = vpop.permute.xlu1 %1420 }
 0x5a4   :  { %v1424_v35 = vmul.f32 %v1421_v24, %v2526_v25  ;;  %v1703_v25 = vld [vmem:[%s2589_s14] ss:$0 sm:$0xff] }
 0x5ab   :  { %v1428_v43 = vpop.permute.xlu1 %1427 }
 0x5ac   :  { %v1434_v38 = vmul.f32 %v1432_v46, %v1428_v43 }
 0x5ae   :  { %v1436_v40 = vrot.slane %v1434_v38, 1 }
 0x5b0   :  { %v1440_v47 = vadd.f32 %v1436_v40, %v1424_v35 }
 0x5b2   :  { %v1442_v48 = vpack.c.bf16 %v1440_v47, %v1440_v47 }
 0x5b3   :  { %v1416_v62 = vpop.permute.xlu1 %1415 }
 0x5b4   :  { %v1423_v19 = vmul.f32 %v1416_v62, %v2533_v10  ;;  %v1454_v51 = vunpack.c.l.b16 %v1442_v48 }
 0x5b6   :  { %v1439_v50 = vadd.f32 %v1434_v38, %v1423_v19  ;;  %v1455_v56 = vrot.slane %v1454_v51, 7 }
 0x5b8   :  { %v1441_v44 = vpack.c.bf16 %v1439_v50, %v1439_v50 }
 0x5ba   :  { %v1453_v60 = vunpack.c.l.b16 %v1441_v44 }
 0x5bb   :  { %v1519_v30 = vpop.permute.xlu1 %1518 }
 0x5bc   :  { %v1456_v41 = vsel %vm1294_vm12, %v1455_v56, %v1453_v60  ;;  %vm1524_vm12 = vcmask 15360  }
 0x5bd   :  { %v1457_v63 = vpack.c.b16 %v1456_v41, %v1456_v41 }
 0x5bf   :  { %1595 = vmatmul.msk.bf16.vlgmr.msrb.gmra.mxu0 %vm70_vm0, %v1457_v63  ;;  %vm1526_vm0 = vcmask 23552  }
 0x5c3   :  { %v1522_v2 = vpop.permute.xlu1 %1521 }
 0x63c   :  { %v1482_v18 = vpop.f32.mrf.mxu0 }
 0x63d   :  { %v1483_v57 = vadd.f32 %v1703_v25, %v1482_v18 }
 0x63f   :  { %v1486_v58 = vmax.f32 %v1483_v57, 0.0 }
 0x641   :  { %v1487_v16 = vpack.c.bf16 %v1486_v58, %v1486_v58 }
 0x643   :  { %1600 = vmatmul.msk.bf16.vlgmr.msrb.gmra.mxu1 %vm245_vm7, %v1487_v16  ;;  %vm1530_vm7 = vcmask 58368  }
 0x644   :  { %v1484_v10 = vpop.f32.mrf.mxu0 }
 0x6c0   :  { %v1512_v27 = vpop.f32.mrf.mxu1 }
 0x6c1   :  { %v1513_v34 = vadd.f32 %v1704_v39, %v1512_v27 }
 0x6c3   :  { %v1525_v42 = vsel %vm1524_vm12, %v1513_v34, %v1519_v30 }
 0x6c4   :  { %v1527_v31 = vsel %vm1526_vm0, %v1525_v42, %v1522_v2 }
 0x6c5   :  { %v1529_v23 = vsel %vm1528_vm15, %v1527_v31, 0.0 }
 0x6c6   :  { %1531 = vst.msk [vmem:[#allocation5] sm:$0x3] %vm1530_vm7, %v1529_v23 }
 0x6c7   :  { %1542 = dma.vmem_to_hbm [thread:$0]  %s1538_s20, 32, %s1540_s5, [#allocation6]  }
 0x6c8   :  { %v1514_v26 = vpop.f32.mrf.mxu1 }
 0x6c9   :  { %1837 = dma.done.wait [#allocation6], 32  }
 0x6ca   :  { %1838 = vsyncadd [#allocation6], 4294967264 }
 0x6cb   :  { %1547 = vsyncpa [#allocation6], 1 }

</bundles_post_ra>
